<compile_context>
chip_gen: v7x
topology: tpu7x:2x2x1
jax: 0.10.0
libtpu: 0.0.40
codegen_flags: <defaults>
</compile_context>

<pallas_src>
import jax
import jax.numpy as jnp
from jax import lax
from jax.experimental import pallas as pl
from jax.experimental.pallas import tpu as pltpu


def clip_loss_kernel(scale_ref, img_ref, txt_t_ref, col_ref, scal_ref,
                     col_max_ref, col_se_ref, m_run_ref, row_acc_ref,
                     diag_acc_ref):
    c = pl.program_id(0)          # row-split (parallel) index
    i = pl.program_id(1)          # row-tile (arbitrary/reduction) index
    nt = pl.num_programs(1)
    tm = img_ref.shape[0]

    @pl.when(i == 0)
    def _init():
        col_max_ref[...] = jnp.full_like(col_max_ref, -jnp.inf)
        col_se_ref[...] = jnp.zeros_like(col_se_ref)
        m_run_ref[...] = jnp.full_like(m_run_ref, -jnp.inf)
        row_acc_ref[...] = jnp.zeros_like(row_acc_ref)
        diag_acc_ref[...] = jnp.zeros_like(diag_acc_ref)

    scale = scale_ref[0, 0]       # exp(logit_scale), precomputed in f32

    # (tm, B) logits: bf16 MXU matmul, f32 accumulation; the scale is applied
    # to the f32 result so it is never bf16-quantized.
    logits = scale * lax.dot_general(
        img_ref[...], txt_t_ref[...],
        dimension_numbers=(((1,), (0,)), ((), ())),
        preferred_element_type=jnp.float32)

    # ---- row-direction (image -> text) LSE: the only full exp pass ----
    m_r = jnp.max(logits, axis=1, keepdims=True)                      # (tm, 1)
    p = jnp.exp(logits - m_r)                                         # (tm, B)
    row_acc_ref[...] = row_acc_ref[...] + jnp.sum(
        jnp.log(jnp.sum(p, axis=1, keepdims=True)) + m_r)

    # ---- column-direction stats, reusing p against a running scalar max M ----
    m_old = m_run_ref[...]                                            # (1, 1)
    m_new = jnp.maximum(m_old, jnp.max(m_r, keepdims=True))           # (1, 1)
    col_se_ref[...] = (col_se_ref[...] * jnp.exp(m_old - m_new)
                       + jnp.sum(p * jnp.exp(m_r - m_new),
                                 axis=0, keepdims=True))
    m_run_ref[...] = m_new
    # Per-column max (cheap XLU sublane reduce): underflow fallback.
    col_max_ref[...] = jnp.maximum(col_max_ref[...],
                                   jnp.max(logits, axis=0, keepdims=True))

    # ---- diagonal (matching-pair) logits straight from the logits tile ----
    start = (c * nt + i) * tm
    rows = lax.broadcasted_iota(jnp.int32, logits.shape, 0)
    cols = lax.broadcasted_iota(jnp.int32, logits.shape, 1)
    diag_acc_ref[...] = diag_acc_ref[...] + jnp.sum(
        jnp.where(cols == rows + start, logits, 0.0))

    @pl.when(i == nt - 1)
    def _finalize():
        se = col_se_ref[...]
        col_lse = jnp.where(se > 0.0, jnp.log(se) + m_run_ref[...],
                            col_max_ref[...])                         # (1, B)
        col_ref[...] = jnp.broadcast_to(col_lse, col_ref.shape)       # (1,8,B)
        lane = lax.broadcasted_iota(jnp.int32, scal_ref.shape, 2)
        scal_ref[...] = (jnp.where(lane == 0, 1.0, 0.0) * row_acc_ref[...]
                         + jnp.where(lane == 1, 1.0, 0.0) * diag_acc_ref[...])


def _vmem_capacity_bytes():
    try:
        cap = getattr(pltpu.get_tpu_info(), "vmem_capacity_bytes", None)
        if cap:
            return int(cap)
    except Exception:
        pass
    return 64 * 1024 * 1024   # conservative (v7x-sized) default


def _num_row_splits():
    # 2-TensorCore chips (v7x, and v4/v5p megacore) benefit from a leading
    # "parallel" row split; single-TC chips (v5e/v6e) keep it at 1.
    try:
        kind = jax.devices()[0].device_kind.lower()
    except Exception:
        return 1
    if "v7" in kind or "v4" in kind or "v5p" in kind:
        return 2
    return 1


def _pick_block_rows(rows, B, D, itemsize, vmem_budget):
    # Budget: resident (D, B) text (single-buffered) + double-buffered (tm, D)
    # image tile + ~3 f32 (tm, B) temporaries (logits / exp / select) + slack.
    fixed = B * D * itemsize + (2 << 20)
    cands = [t for t in (512, 256, 128, 64, 32, 16, 8)
             if t <= rows and rows % t == 0]
    if not cands:
        cands = [rows]
    for tm in cands:
        if fixed + 2 * tm * D * itemsize + 3 * tm * B * 4 <= vmem_budget:
            return tm
    return cands[-1]


def clip_loss(image_features, text_features, logit_scale, *,
              block_rows=None, row_splits=None, cast_to_bf16=True):
    B, D = image_features.shape
    assert text_features.shape == (B, D)

    # bf16 MXU operands (full-rate MXU on v5e, halves text VMEM/HBM traffic);
    # accumulation stays f32 via preferred_element_type.
    if cast_to_bf16 and image_features.dtype == jnp.float32:
        image_features = image_features.astype(jnp.bfloat16)
    if cast_to_bf16 and text_features.dtype == jnp.float32:
        text_features = text_features.astype(jnp.bfloat16)
    itemsize = jnp.dtype(image_features.dtype).itemsize

    ns = _num_row_splits() if row_splits is None else row_splits
    if B % ns != 0 or (B // ns) % 8 != 0:
        ns = 1
    rows = B // ns

    # Generation-aware VMEM limit (leave ~20% headroom): ~102 MiB on v5e/v6e,
    # ~51 MiB on v7x.
    vmem_limit = int(_vmem_capacity_bytes() * 4 // 5)
    if block_rows is None:
        tm = _pick_block_rows(rows, B, D, itemsize, vmem_limit - (4 << 20))
    else:
        tm = block_rows
    assert rows % tm == 0, "rows per split must be divisible by the row tile"
    nt = rows // tm

    scale = jnp.exp(jnp.reshape(logit_scale, (1, 1)).astype(jnp.float32))
    txt_t = jnp.transpose(text_features)          # (D, B), staged once

    out_shape = (
        jax.ShapeDtypeStruct((ns, 8, B), jnp.float32),    # per-split column LSE
        jax.ShapeDtypeStruct((ns, 8, 128), jnp.float32),  # per-split row/diag sums
    )
    out_specs = (
        pl.BlockSpec((1, 8, B), lambda c, i: (c, 0, 0)),
        pl.BlockSpec((1, 8, 128), lambda c, i: (c, 0, 0)),
    )
    scratch = [
        pltpu.VMEM((1, B), jnp.float32),   # per-column max (fallback)
        pltpu.VMEM((1, B), jnp.float32),   # per-column sum-exp (vs. running M)
        pltpu.VMEM((1, 1), jnp.float32),   # running scalar max M
        pltpu.VMEM((1, 1), jnp.float32),   # sum of row LSE
        pltpu.VMEM((1, 1), jnp.float32),   # sum of diagonal logits
    ]
    cost = pl.CostEstimate(
        flops=2 * B * B * D + 8 * B * B,
        transcendentals=B * B + 4 * B,
        bytes_accessed=2 * B * D * itemsize + ns * 8 * (B + 128) * 4,
    )
    cparams = pltpu.CompilerParams(
        dimension_semantics=("parallel", "arbitrary"),
        vmem_limit_bytes=vmem_limit,
    )

    def _run(single_buffer_text):
        txt_kwargs = {}
        if single_buffer_text:
            # Constant block index -> one buffer is enough; halves text VMEM.
            txt_kwargs["pipeline_mode"] = pl.Buffered(1)
        grid_spec = pltpu.PrefetchScalarGridSpec(
            num_scalar_prefetch=0,
            grid=(ns, nt),
            in_specs=[
                pl.BlockSpec(memory_space=pltpu.SMEM),                 # exp(scale)
                pl.BlockSpec((tm, D), lambda c, i: (c * nt + i, 0)),   # image tile
                pl.BlockSpec((D, B), lambda c, i: (0, 0), **txt_kwargs),
            ],
            out_specs=out_specs,
            scratch_shapes=scratch,
        )
        return pl.pallas_call(
            clip_loss_kernel,
            out_shape=out_shape,
            grid_spec=grid_spec,
            compiler_params=cparams,
            cost_estimate=cost,
        )(scale, image_features, txt_t)

    try:
        col_out, scal_out = _run(True)
        col_out, scal_out = jax.block_until_ready((col_out, scal_out))
    except Exception:
        # Fallback if this JAX version rejects Buffered(1) on a resident block.
        col_out, scal_out = _run(False)

    # Tiny epilogue: merge per-split partial stats.
    col_parts = col_out[:, 0, :]                  # (ns, B)
    if ns == 1:
        col_lse = col_parts[0]
    else:
        m = jnp.max(col_parts, axis=0)
        col_lse = m + jnp.log(jnp.sum(jnp.exp(col_parts - m), axis=0))
    row_sum = jnp.sum(scal_out[:, 0, 0])
    diag_sum = jnp.sum(scal_out[:, 0, 1])
    return (0.5 * (row_sum + jnp.sum(col_lse)) - diag_sum) / B


def clip_loss_ref(image_features, text_features, logit_scale):
    # Pure-JAX reference mirroring the PyTorch module.
    img = image_features.astype(jnp.float32)
    txt = text_features.astype(jnp.float32)
    logits = jnp.exp(logit_scale.astype(jnp.float32)) * (img @ txt.T)
    labels = jnp.arange(logits.shape[0])
    log_p_r = jax.nn.log_softmax(logits, axis=1)
    log_p_c = jax.nn.log_softmax(logits.T, axis=1)
    loss_i2t = -jnp.mean(log_p_r[labels, labels])
    loss_t2i = -jnp.mean(log_p_c[labels, labels])
    return 0.5 * (loss_i2t + loss_t2i)


if __name__ == "__main__":
    key = jax.random.PRNGKey(0)
    k1, k2 = jax.random.split(key)
    B, D = 32, 128   # small shapes: batch=32, feature dim=128

    img = jax.random.normal(k1, (B, D), dtype=jnp.float32)
    txt = jax.random.normal(k2, (B, D), dtype=jnp.float32)
    img = img / jnp.linalg.norm(img, axis=-1, keepdims=True)
    txt = txt / jnp.linalg.norm(txt, axis=-1, keepdims=True)
    # Snap to bf16-representable values so the bf16 MXU path and the f32
    # reference agree tightly.
    img = img.astype(jnp.bfloat16).astype(jnp.float32)
    txt = txt.astype(jnp.bfloat16).astype(jnp.float32)
    logit_scale = jnp.log(jnp.float32(16.0))

    ref = clip_loss_ref(img, txt, logit_scale)

    # Multi-tile path (4 row tiles of 8 rows): exercises the online column LSE.
    loss_tiled = clip_loss(img, txt, logit_scale, block_rows=8)
    loss_tiled = jax.block_until_ready(loss_tiled)
    assert jnp.allclose(loss_tiled, ref, atol=1e-3, rtol=1e-3), (loss_tiled, ref)

    # Two-way row split (the v7x dual-TensorCore path) + epilogue combine.
    loss_split = clip_loss(img, txt, logit_scale, block_rows=8, row_splits=2)
    loss_split = jax.block_until_ready(loss_split)
    assert jnp.allclose(loss_split, ref, atol=1e-3, rtol=1e-3), (loss_split, ref)

    # Default (VMEM- and generation-aware) tiling.
    loss_default = clip_loss(img, txt, logit_scale)
    loss_default = jax.block_until_ready(loss_default)
    assert jnp.allclose(loss_default, ref, atol=1e-3, rtol=1e-3), (loss_default, ref)

    print("KERNEL_OK")
</pallas_src>

<mosaic_0001>
module attributes {stable_mosaic.version = 11 : i64} {
  func.func @clip_loss_kernel(%arg0: i32, %arg1: i32, %arg2: memref<1x1xf32, #tpu.memory_space<smem>>, %arg3: memref<8x128xbf16, #tpu.memory_space<vmem>>, %arg4: memref<128x32xbf16, #tpu.memory_space<vmem>>, %arg5: memref<1x8x32xf32, #tpu.memory_space<vmem>>, %arg6: memref<1x8x128xf32, #tpu.memory_space<vmem>>, %arg7: memref<1x32xf32, #tpu.memory_space<vmem>>, %arg8: memref<1x32xf32, #tpu.memory_space<vmem>>, %arg9: memref<1x1xf32, #tpu.memory_space<vmem>>, %arg10: memref<1x1xf32, #tpu.memory_space<vmem>>, %arg11: memref<1x1xf32, #tpu.memory_space<vmem>>) attributes {dimension_semantics = [#tpu.dimension_semantics<parallel>, #tpu.dimension_semantics<arbitrary>], iteration_bounds = array<i64: 1, 4>, scalar_prefetch = 0 : i64, scratch_operands = 5 : i64, tpu.core_type = #tpu.core_type<tc>, window_params = [{transform_indices = @transform_0, window_bounds = array<i64: 1, 1>}, {transform_indices = @transform_1, window_bounds = array<i64: 8, 128>}, {pipeline_mode = #tpu.pipeline_mode<synchronous>, transform_indices = @transform_2, window_bounds = array<i64: 128, 32>}, {transform_indices = @transform_3, window_bounds = array<i64: 1, 8, 32>}, {transform_indices = @transform_4, window_bounds = array<i64: 1, 8, 128>}]} {
    %c0_i32 = arith.constant 0 : i32
    %0 = arith.cmpi eq, %arg1, %c0_i32 : i32
    %1 = arith.extui %0 : i1 to i32
    %c0_i32_0 = arith.constant 0 : i32
    %2 = arith.cmpi ne, %1, %c0_i32_0 : i32
    scf.if %2 {
      %cst_35 = arith.constant 0xFF800000 : f32
      %74 = vector.broadcast %cst_35 : f32 to vector<1x32xf32>
      %c0_36 = arith.constant 0 : index
      %c0_37 = arith.constant 0 : index
      %75 = vector.load %arg7[%c0_36, %c0_37] : memref<1x32xf32, #tpu.memory_space<vmem>>, vector<1x32xf32>
      tpu.vector_store %arg7[%c0_36, %c0_37], %74 {strides = array<i32>} : memref<1x32xf32, #tpu.memory_space<vmem>>, vector<1x32xf32>,
      %cst_38 = arith.constant 0.000000e+00 : f32
      %76 = vector.broadcast %cst_38 : f32 to vector<1x32xf32>
      %c0_39 = arith.constant 0 : index
      %c0_40 = arith.constant 0 : index
      %77 = vector.load %arg8[%c0_39, %c0_40] : memref<1x32xf32, #tpu.memory_space<vmem>>, vector<1x32xf32>
      tpu.vector_store %arg8[%c0_39, %c0_40], %76 {strides = array<i32>} : memref<1x32xf32, #tpu.memory_space<vmem>>, vector<1x32xf32>,
      %cst_41 = arith.constant 0xFF800000 : f32
      %78 = vector.broadcast %cst_41 : f32 to vector<1x1xf32>
      %c0_42 = arith.constant 0 : index
      %c0_43 = arith.constant 0 : index
      %79 = vector.load %arg9[%c0_42, %c0_43] : memref<1x1xf32, #tpu.memory_space<vmem>>, vector<1x1xf32>
      tpu.vector_store %arg9[%c0_42, %c0_43], %78 {strides = array<i32>} : memref<1x1xf32, #tpu.memory_space<vmem>>, vector<1x1xf32>,
      %cst_44 = arith.constant 0.000000e+00 : f32
      %80 = vector.broadcast %cst_44 : f32 to vector<1x1xf32>
      %c0_45 = arith.constant 0 : index
      %c0_46 = arith.constant 0 : index
      %81 = vector.load %arg10[%c0_45, %c0_46] : memref<1x1xf32, #tpu.memory_space<vmem>>, vector<1x1xf32>
      tpu.vector_store %arg10[%c0_45, %c0_46], %80 {strides = array<i32>} : memref<1x1xf32, #tpu.memory_space<vmem>>, vector<1x1xf32>,
      %cst_47 = arith.constant 0.000000e+00 : f32
      %82 = vector.broadcast %cst_47 : f32 to vector<1x1xf32>
      %c0_48 = arith.constant 0 : index
      %c0_49 = arith.constant 0 : index
      %83 = vector.load %arg11[%c0_48, %c0_49] : memref<1x1xf32, #tpu.memory_space<vmem>>, vector<1x1xf32>
      tpu.vector_store %arg11[%c0_48, %c0_49], %82 {strides = array<i32>} : memref<1x1xf32, #tpu.memory_space<vmem>>, vector<1x1xf32>,
    } else {
    }
    %c0 = arith.constant 0 : index
    %c0_1 = arith.constant 0 : index
    %3 = memref.load %arg2[%c0, %c0_1] : memref<1x1xf32, #tpu.memory_space<smem>>
    %c0_2 = arith.constant 0 : index
    %c0_3 = arith.constant 0 : index
    %4 = vector.load %arg3[%c0_2, %c0_3] : memref<8x128xbf16, #tpu.memory_space<vmem>>, vector<8x128xbf16>
    %c0_4 = arith.constant 0 : index
    %c0_5 = arith.constant 0 : index
    %5 = vector.load %arg4[%c0_4, %c0_5] : memref<128x32xbf16, #tpu.memory_space<vmem>>, vector<128x32xbf16>
    %cst = arith.constant dense<0.000000e+00> : vector<8x32xf32>
    %6 = tpu.matmul %4, %5, %cst {dimension_numbers = #tpu.dot_dimension_numbers<[1], [0], [0], [1], [0, 0, 1, 1], [], []>} : vector<8x128xbf16>, vector<128x32xbf16>, vector<8x32xf32> -> vector<8x32xf32>
    %7 = vector.broadcast %3 : f32 to vector<8x32xf32>
    %8 = arith.mulf %7, %6 : vector<8x32xf32>
    %cst_6 = arith.constant dense<0xFF800000> : vector<8xf32>
    %9 = vector.multi_reduction <maximumf>, %8, %cst_6 [1] : vector<8x32xf32> to vector<8xf32>
    %10 = vector.shape_cast %9 : vector<8xf32> to vector<8x1xf32>
    %11 = vector.broadcast %10 : vector<8x1xf32> to vector<8x32xf32>
    %12 = arith.subf %8, %11 : vector<8x32xf32>
    %13 = math.exp %12 : vector<8x32xf32>
    %c0_7 = arith.constant 0 : index
    %c0_8 = arith.constant 0 : index
    %14 = vector.load %arg10[%c0_7, %c0_8] : memref<1x1xf32, #tpu.memory_space<vmem>>, vector<1x1xf32>
    %cst_9 = arith.constant dense<0.000000e+00> : vector<8xf32>
    %15 = vector.multi_reduction <add>, %13, %cst_9 [1] : vector<8x32xf32> to vector<8xf32>
    %16 = vector.shape_cast %15 : vector<8xf32> to vector<8x1xf32>
    %17 = math.log %16 : vector<8x1xf32>
    %18 = arith.addf %17, %10 : vector<8x1xf32>
    %19 = vector.shape_cast %18 : vector<8x1xf32> to vector<1x8x1xf32>
    %cst_10 = arith.constant dense<0.000000e+00> : vector<1xf32>
    %20 = vector.multi_reduction <add>, %19, %cst_10 [1, 2] : vector<1x8x1xf32> to vector<1xf32>
    %21 = vector.shape_cast %20 : vector<1xf32> to vector<1x1x1xf32>
    %22 = vector.extract %21[0, 0, 0] : f32 from vector<1x1x1xf32>
    %23 = vector.broadcast %22 : f32 to vector<1x1xf32>
    %24 = arith.addf %14, %23 : vector<1x1xf32>
    %c0_11 = arith.constant 0 : index
    %c0_12 = arith.constant 0 : index
    %25 = vector.load %arg10[%c0_11, %c0_12] : memref<1x1xf32, #tpu.memory_space<vmem>>, vector<1x1xf32>
    tpu.vector_store %arg10[%c0_11, %c0_12], %24 {strides = array<i32>} : memref<1x1xf32, #tpu.memory_space<vmem>>, vector<1x1xf32>,
    %c0_13 = arith.constant 0 : index
    %c0_14 = arith.constant 0 : index
    %26 = vector.load %arg9[%c0_13, %c0_14] : memref<1x1xf32, #tpu.memory_space<vmem>>, vector<1x1xf32>
    %27 = vector.shape_cast %10 : vector<8x1xf32> to vector<1x8x1xf32>
    %cst_15 = arith.constant dense<0xFF800000> : vector<1xf32>
    %28 = vector.multi_reduction <maximumf>, %27, %cst_15 [1, 2] : vector<1x8x1xf32> to vector<1xf32>
    %29 = vector.shape_cast %28 : vector<1xf32> to vector<1x1x1xf32>
    %30 = vector.extract %29[0, 0, 0] : f32 from vector<1x1x1xf32>
    %31 = vector.broadcast %30 : f32 to vector<1x1xf32>
    %32 = arith.maximumf %26, %31 : vector<1x1xf32>
    %c0_16 = arith.constant 0 : index
    %c0_17 = arith.constant 0 : index
    %33 = vector.load %arg8[%c0_16, %c0_17] : memref<1x32xf32, #tpu.memory_space<vmem>>, vector<1x32xf32>
    %34 = arith.subf %26, %32 : vector<1x1xf32>
    %35 = math.exp %34 : vector<1x1xf32>
    %36 = vector.broadcast %35 : vector<1x1xf32> to vector<1x32xf32>
    %37 = arith.mulf %33, %36 : vector<1x32xf32>
    %38 = vector.broadcast %32 : vector<1x1xf32> to vector<8x1xf32>
    %39 = arith.subf %10, %38 : vector<8x1xf32>
    %40 = math.exp %39 : vector<8x1xf32>
    %41 = vector.broadcast %40 : vector<8x1xf32> to vector<8x32xf32>
    %42 = arith.mulf %13, %41 : vector<8x32xf32>
    %cst_18 = arith.constant dense<0.000000e+00> : vector<32xf32>
    %43 = vector.multi_reduction <add>, %42, %cst_18 [0] : vector<8x32xf32> to vector<32xf32>
    %44 = vector.shape_cast %43 : vector<32xf32> to vector<1x32xf32>
    %45 = arith.addf %37, %44 : vector<1x32xf32>
    %c0_19 = arith.constant 0 : index
    %c0_20 = arith.constant 0 : index
    %46 = vector.load %arg8[%c0_19, %c0_20] : memref<1x32xf32, #tpu.memory_space<vmem>>, vector<1x32xf32>
    tpu.vector_store %arg8[%c0_19, %c0_20], %45 {strides = array<i32>} : memref<1x32xf32, #tpu.memory_space<vmem>>, vector<1x32xf32>,
    %c0_21 = arith.constant 0 : index
    %c0_22 = arith.constant 0 : index
    %47 = vector.load %arg9[%c0_21, %c0_22] : memref<1x1xf32, #tpu.memory_space<vmem>>, vector<1x1xf32>
    tpu.vector_store %arg9[%c0_21, %c0_22], %32 {strides = array<i32>} : memref<1x1xf32, #tpu.memory_space<vmem>>, vector<1x1xf32>,
    %c0_23 = arith.constant 0 : index
    %c0_24 = arith.constant 0 : index
    %48 = vector.load %arg7[%c0_23, %c0_24] : memref<1x32xf32, #tpu.memory_space<vmem>>, vector<1x32xf32>
    %cst_25 = arith.constant dense<0xFF800000> : vector<32xf32>
    %49 = vector.multi_reduction <maximumf>, %8, %cst_25 [0] : vector<8x32xf32> to vector<32xf32>
    %50 = vector.shape_cast %49 : vector<32xf32> to vector<1x32xf32>
    %51 = arith.maximumf %48, %50 : vector<1x32xf32>
    %c0_26 = arith.constant 0 : index
    %c0_27 = arith.constant 0 : index
    %52 = vector.load %arg7[%c0_26, %c0_27] : memref<1x32xf32, #tpu.memory_space<vmem>>, vector<1x32xf32>
    tpu.vector_store %arg7[%c0_26, %c0_27], %51 {strides = array<i32>} : memref<1x32xf32, #tpu.memory_space<vmem>>, vector<1x32xf32>,
    %c4_i32 = arith.constant 4 : i32
    %53 = arith.muli %arg0, %c4_i32 : i32
    %54 = arith.addi %53, %arg1 : i32
    %c8_i32 = arith.constant 8 : i32
    %55 = arith.muli %54, %c8_i32 : i32
    %56 = tpu.iota {dimensions = array<i32: 0>} : vector<8x32xi32>
    %57 = tpu.iota {dimensions = array<i32: 1>} : vector<8x32xi32>
    %c0_28 = arith.constant 0 : index
    %c0_29 = arith.constant 0 : index
    %58 = vector.load %arg11[%c0_28, %c0_29] : memref<1x1xf32, #tpu.memory_space<vmem>>, vector<1x1xf32>
    %59 = vector.broadcast %55 : i32 to vector<8x32xi32>
    %60 = arith.addi %56, %59 : vector<8x32xi32>
    %61 = arith.cmpi eq, %57, %60 : vector<8x32xi32>
    %cst_30 = arith.constant 0.000000e+00 : f32
    %62 = vector.broadcast %cst_30 : f32 to vector<8x32xf32>
    %63 = arith.select %61, %8, %62 : vector<8x32xi1>, vector<8x32xf32>
    %64 = vector.shape_cast %63 : vector<8x32xf32> to vector<1x8x32xf32>
    %cst_31 = arith.constant dense<0.000000e+00> : vector<1xf32>
    %65 = vector.multi_reduction <add>, %64, %cst_31 [1, 2] : vector<1x8x32xf32> to vector<1xf32>
    %66 = vector.shape_cast %65 : vector<1xf32> to vector<1x1x1xf32>
    %67 = vector.extract %66[0, 0, 0] : f32 from vector<1x1x1xf32>
    %68 = vector.broadcast %67 : f32 to vector<1x1xf32>
    %69 = arith.addf %58, %68 : vector<1x1xf32>
    %c0_32 = arith.constant 0 : index
    %c0_33 = arith.constant 0 : index
    %70 = vector.load %arg11[%c0_32, %c0_33] : memref<1x1xf32, #tpu.memory_space<vmem>>, vector<1x1xf32>
    tpu.vector_store %arg11[%c0_32, %c0_33], %69 {strides = array<i32>} : memref<1x1xf32, #tpu.memory_space<vmem>>, vector<1x1xf32>,
    %c3_i32 = arith.constant 3 : i32
    %71 = arith.cmpi eq, %arg1, %c3_i32 : i32
    %72 = arith.extui %71 : i1 to i32
    %c0_i32_34 = arith.constant 0 : i32
    %73 = arith.cmpi ne, %72, %c0_i32_34 : i32
    scf.if %73 {
      %c0_35 = arith.constant 0 : index
      %c0_36 = arith.constant 0 : index
      %74 = vector.load %arg8[%c0_35, %c0_36] : memref<1x32xf32, #tpu.memory_space<vmem>>, vector<1x32xf32>
      %cst_37 = arith.constant 0.000000e+00 : f32
      %75 = vector.broadcast %cst_37 : f32 to vector<1x32xf32>
      %76 = arith.cmpf ogt, %74, %75 : vector<1x32xf32>
      %77 = math.log %74 : vector<1x32xf32>
      %c0_38 = arith.constant 0 : index
      %c0_39 = arith.constant 0 : index
      %78 = vector.load %arg9[%c0_38, %c0_39] : memref<1x1xf32, #tpu.memory_space<vmem>>, vector<1x1xf32>
      %79 = vector.broadcast %78 : vector<1x1xf32> to vector<1x32xf32>
      %80 = arith.addf %77, %79 : vector<1x32xf32>
      %c0_40 = arith.constant 0 : index
      %c0_41 = arith.constant 0 : index
      %81 = vector.load %arg7[%c0_40, %c0_41] : memref<1x32xf32, #tpu.memory_space<vmem>>, vector<1x32xf32>
      %82 = arith.select %76, %80, %81 : vector<1x32xi1>, vector<1x32xf32>
      %83 = vector.shape_cast %82 : vector<1x32xf32> to vector<1x1x32xf32>
      %84 = vector.broadcast %83 : vector<1x1x32xf32> to vector<1x8x32xf32>
      %c0_42 = arith.constant 0 : index
      %c0_43 = arith.constant 0 : index
      %c0_44 = arith.constant 0 : index
      %85 = vector.load %arg5[%c0_42, %c0_43, %c0_44] : memref<1x8x32xf32, #tpu.memory_space<vmem>>, vector<1x8x32xf32>
      tpu.vector_store %arg5[%c0_42, %c0_43, %c0_44], %84 {strides = array<i32>} : memref<1x8x32xf32, #tpu.memory_space<vmem>>, vector<1x8x32xf32>,
      %86 = tpu.iota {dimensions = array<i32: 2>} : vector<1x8x128xi32>
      %c0_i32_45 = arith.constant 0 : i32
      %87 = vector.broadcast %c0_i32_45 : i32 to vector<1x8x128xi32>
      %88 = arith.cmpi eq, %86, %87 : vector<1x8x128xi32>
      %cst_46 = arith.constant 1.000000e+00 : f32
      %cst_47 = arith.constant 0.000000e+00 : f32
      %89 = vector.broadcast %cst_46 : f32 to vector<1x8x128xf32>
      %90 = vector.broadcast %cst_47 : f32 to vector<1x8x128xf32>
      %91 = arith.select %88, %89, %90 : vector<1x8x128xi1>, vector<1x8x128xf32>
      %c0_48 = arith.constant 0 : index
      %c0_49 = arith.constant 0 : index
      %92 = vector.load %arg10[%c0_48, %c0_49] : memref<1x1xf32, #tpu.memory_space<vmem>>, vector<1x1xf32>
      %93 = vector.shape_cast %92 : vector<1x1xf32> to vector<1x1x1xf32>
      %94 = vector.broadcast %93 : vector<1x1x1xf32> to vector<1x8x128xf32>
      %95 = arith.mulf %91, %94 : vector<1x8x128xf32>
      %c1_i32 = arith.constant 1 : i32
      %96 = vector.broadcast %c1_i32 : i32 to vector<1x8x128xi32>
      %97 = arith.cmpi eq, %86, %96 : vector<1x8x128xi32>
      %cst_50 = arith.constant 1.000000e+00 : f32
      %cst_51 = arith.constant 0.000000e+00 : f32
      %98 = vector.broadcast %cst_50 : f32 to vector<1x8x128xf32>
      %99 = vector.broadcast %cst_51 : f32 to vector<1x8x128xf32>
      %100 = arith.select %97, %98, %99 : vector<1x8x128xi1>, vector<1x8x128xf32>
      %c0_52 = arith.constant 0 : index
      %c0_53 = arith.constant 0 : index
      %101 = vector.load %arg11[%c0_52, %c0_53] : memref<1x1xf32, #tpu.memory_space<vmem>>, vector<1x1xf32>
      %102 = vector.shape_cast %101 : vector<1x1xf32> to vector<1x1x1xf32>
      %103 = vector.broadcast %102 : vector<1x1x1xf32> to vector<1x8x128xf32>
      %104 = arith.mulf %100, %103 : vector<1x8x128xf32>
      %105 = arith.addf %95, %104 : vector<1x8x128xf32>
      %c0_54 = arith.constant 0 : index
      %c0_55 = arith.constant 0 : index
      %c0_56 = arith.constant 0 : index
      %106 = vector.load %arg6[%c0_54, %c0_55, %c0_56] : memref<1x8x128xf32, #tpu.memory_space<vmem>>, vector<1x8x128xf32>
      tpu.vector_store %arg6[%c0_54, %c0_55, %c0_56], %105 {strides = array<i32>} : memref<1x8x128xf32, #tpu.memory_space<vmem>>, vector<1x8x128xf32>,
    } else {
    }
    return
  }
  func.func @transform_0(%arg0: i32, %arg1: i32) -> (i32, i32) {
    %c0_i32 = arith.constant 0 : i32
    %c0_i32_0 = arith.constant 0 : i32
    %c0_i32_1 = arith.constant 0 : i32
    return %c0_i32, %c0_i32_0 : i32, i32
  }
  func.func @transform_1(%arg0: i32, %arg1: i32) -> (i32, i32) {
    %c4_i32 = arith.constant 4 : i32
    %0 = arith.muli %arg0, %c4_i32 : i32
    %1 = arith.addi %0, %arg1 : i32
    %c0_i32 = arith.constant 0 : i32
    %c0_i32_0 = arith.constant 0 : i32
    return %1, %c0_i32 : i32, i32
  }
  func.func @transform_2(%arg0: i32, %arg1: i32) -> (i32, i32) {
    %c0_i32 = arith.constant 0 : i32
    %c0_i32_0 = arith.constant 0 : i32
    %c0_i32_1 = arith.constant 0 : i32
    return %c0_i32, %c0_i32_0 : i32, i32
  }
  func.func @transform_3(%arg0: i32, %arg1: i32) -> (i32, i32, i32) {
    %c0_i32 = arith.constant 0 : i32
    %c0_i32_0 = arith.constant 0 : i32
    %c0_i32_1 = arith.constant 0 : i32
    return %arg0, %c0_i32, %c0_i32_0 : i32, i32, i32
  }
  func.func @transform_4(%arg0: i32, %arg1: i32) -> (i32, i32, i32) {
    %c0_i32 = arith.constant 0 : i32
    %c0_i32_0 = arith.constant 0 : i32
    %c0_i32_1 = arith.constant 0 : i32
    return %arg0, %c0_i32, %c0_i32_0 : i32, i32, i32
  }
}

module attributes {stable_mosaic.version = 11 : i64} {
  func.func @clip_loss_kernel(%arg0: i32, %arg1: i32, %arg2: memref<1x1xf32, #tpu.memory_space<smem>>, %arg3: memref<8x128xbf16, #tpu.memory_space<vmem>>, %arg4: memref<128x32xbf16, #tpu.memory_space<vmem>>, %arg5: memref<1x8x32xf32, #tpu.memory_space<vmem>>, %arg6: memref<1x8x128xf32, #tpu.memory_space<vmem>>, %arg7: memref<1x32xf32, #tpu.memory_space<vmem>>, %arg8: memref<1x32xf32, #tpu.memory_space<vmem>>, %arg9: memref<1x1xf32, #tpu.memory_space<vmem>>, %arg10: memref<1x1xf32, #tpu.memory_space<vmem>>, %arg11: memref<1x1xf32, #tpu.memory_space<vmem>>) attributes {dimension_semantics = [#tpu.dimension_semantics<parallel>, #tpu.dimension_semantics<arbitrary>], iteration_bounds = array<i64: 1, 4>, scalar_prefetch = 0 : i64, scratch_operands = 5 : i64, tpu.core_type = #tpu.core_type<tc>, window_params = [{transform_indices = @transform_0, window_bounds = array<i64: 1, 1>}, {transform_indices = @transform_1, window_bounds = array<i64: 8, 128>}, {pipeline_mode = #tpu.pipeline_mode<synchronous>, transform_indices = @transform_2, window_bounds = array<i64: 128, 32>}, {transform_indices = @transform_3, window_bounds = array<i64: 1, 8, 32>}, {transform_indices = @transform_4, window_bounds = array<i64: 1, 8, 128>}]} {
    %c0_i32 = arith.constant 0 : i32
    %0 = arith.cmpi eq, %arg1, %c0_i32 : i32
    %1 = arith.extui %0 : i1 to i32
    %c0_i32_0 = arith.constant 0 : i32
    %2 = arith.cmpi ne, %1, %c0_i32_0 : i32
    scf.if %2 {
      %cst_35 = arith.constant 0xFF800000 : f32
      %74 = vector.broadcast %cst_35 : f32 to vector<1x32xf32>
      %c0_36 = arith.constant 0 : index
      %c0_37 = arith.constant 0 : index
      %75 = vector.load %arg7[%c0_36, %c0_37] : memref<1x32xf32, #tpu.memory_space<vmem>>, vector<1x32xf32>
      tpu.vector_store %arg7[%c0_36, %c0_37], %74 {strides = array<i32>} : memref<1x32xf32, #tpu.memory_space<vmem>>, vector<1x32xf32>,
      %cst_38 = arith.constant 0.000000e+00 : f32
      %76 = vector.broadcast %cst_38 : f32 to vector<1x32xf32>
      %c0_39 = arith.constant 0 : index
      %c0_40 = arith.constant 0 : index
      %77 = vector.load %arg8[%c0_39, %c0_40] : memref<1x32xf32, #tpu.memory_space<vmem>>, vector<1x32xf32>
      tpu.vector_store %arg8[%c0_39, %c0_40], %76 {strides = array<i32>} : memref<1x32xf32, #tpu.memory_space<vmem>>, vector<1x32xf32>,
      %cst_41 = arith.constant 0xFF800000 : f32
      %78 = vector.broadcast %cst_41 : f32 to vector<1x1xf32>
      %c0_42 = arith.constant 0 : index
      %c0_43 = arith.constant 0 : index
      %79 = vector.load %arg9[%c0_42, %c0_43] : memref<1x1xf32, #tpu.memory_space<vmem>>, vector<1x1xf32>
      tpu.vector_store %arg9[%c0_42, %c0_43], %78 {strides = array<i32>} : memref<1x1xf32, #tpu.memory_space<vmem>>, vector<1x1xf32>,
      %cst_44 = arith.constant 0.000000e+00 : f32
      %80 = vector.broadcast %cst_44 : f32 to vector<1x1xf32>
      %c0_45 = arith.constant 0 : index
      %c0_46 = arith.constant 0 : index
      %81 = vector.load %arg10[%c0_45, %c0_46] : memref<1x1xf32, #tpu.memory_space<vmem>>, vector<1x1xf32>
      tpu.vector_store %arg10[%c0_45, %c0_46], %80 {strides = array<i32>} : memref<1x1xf32, #tpu.memory_space<vmem>>, vector<1x1xf32>,
      %cst_47 = arith.constant 0.000000e+00 : f32
      %82 = vector.broadcast %cst_47 : f32 to vector<1x1xf32>
      %c0_48 = arith.constant 0 : index
      %c0_49 = arith.constant 0 : index
      %83 = vector.load %arg11[%c0_48, %c0_49] : memref<1x1xf32, #tpu.memory_space<vmem>>, vector<1x1xf32>
      tpu.vector_store %arg11[%c0_48, %c0_49], %82 {strides = array<i32>} : memref<1x1xf32, #tpu.memory_space<vmem>>, vector<1x1xf32>,
    } else {
    }
    %c0 = arith.constant 0 : index
    %c0_1 = arith.constant 0 : index
    %3 = memref.load %arg2[%c0, %c0_1] : memref<1x1xf32, #tpu.memory_space<smem>>
    %c0_2 = arith.constant 0 : index
    %c0_3 = arith.constant 0 : index
    %4 = vector.load %arg3[%c0_2, %c0_3] : memref<8x128xbf16, #tpu.memory_space<vmem>>, vector<8x128xbf16>
    %c0_4 = arith.constant 0 : index
    %c0_5 = arith.constant 0 : index
    %5 = vector.load %arg4[%c0_4, %c0_5] : memref<128x32xbf16, #tpu.memory_space<vmem>>, vector<128x32xbf16>
    %cst = arith.constant dense<0.000000e+00> : vector<8x32xf32>
    %6 = tpu.matmul %4, %5, %cst {dimension_numbers = #tpu.dot_dimension_numbers<[1], [0], [0], [1], [0, 0, 1, 1], [], []>} : vector<8x128xbf16>, vector<128x32xbf16>, vector<8x32xf32> -> vector<8x32xf32>
    %7 = vector.broadcast %3 : f32 to vector<8x32xf32>
    %8 = arith.mulf %7, %6 : vector<8x32xf32>
    %cst_6 = arith.constant dense<0xFF800000> : vector<8xf32>
    %9 = vector.multi_reduction <maximumf>, %8, %cst_6 [1] : vector<8x32xf32> to vector<8xf32>
    %10 = vector.shape_cast %9 : vector<8xf32> to vector<8x1xf32>
    %11 = vector.broadcast %10 : vector<8x1xf32> to vector<8x32xf32>
    %12 = arith.subf %8, %11 : vector<8x32xf32>
    %13 = math.exp %12 : vector<8x32xf32>
    %c0_7 = arith.constant 0 : index
    %c0_8 = arith.constant 0 : index
    %14 = vector.load %arg10[%c0_7, %c0_8] : memref<1x1xf32, #tpu.memory_space<vmem>>, vector<1x1xf32>
    %cst_9 = arith.constant dense<0.000000e+00> : vector<8xf32>
    %15 = vector.multi_reduction <add>, %13, %cst_9 [1] : vector<8x32xf32> to vector<8xf32>
    %16 = vector.shape_cast %15 : vector<8xf32> to vector<8x1xf32>
    %17 = math.log %16 : vector<8x1xf32>
    %18 = arith.addf %17, %10 : vector<8x1xf32>
    %19 = vector.shape_cast %18 : vector<8x1xf32> to vector<1x8x1xf32>
    %cst_10 = arith.constant dense<0.000000e+00> : vector<1xf32>
    %20 = vector.multi_reduction <add>, %19, %cst_10 [1, 2] : vector<1x8x1xf32> to vector<1xf32>
    %21 = vector.shape_cast %20 : vector<1xf32> to vector<1x1x1xf32>
    %22 = vector.extract %21[0, 0, 0] : f32 from vector<1x1x1xf32>
    %23 = vector.broadcast %22 : f32 to vector<1x1xf32>
    %24 = arith.addf %14, %23 : vector<1x1xf32>
    %c0_11 = arith.constant 0 : index
    %c0_12 = arith.constant 0 : index
    %25 = vector.load %arg10[%c0_11, %c0_12] : memref<1x1xf32, #tpu.memory_space<vmem>>, vector<1x1xf32>
    tpu.vector_store %arg10[%c0_11, %c0_12], %24 {strides = array<i32>} : memref<1x1xf32, #tpu.memory_space<vmem>>, vector<1x1xf32>,
    %c0_13 = arith.constant 0 : index
    %c0_14 = arith.constant 0 : index
    %26 = vector.load %arg9[%c0_13, %c0_14] : memref<1x1xf32, #tpu.memory_space<vmem>>, vector<1x1xf32>
    %27 = vector.shape_cast %10 : vector<8x1xf32> to vector<1x8x1xf32>
    %cst_15 = arith.constant dense<0xFF800000> : vector<1xf32>
    %28 = vector.multi_reduction <maximumf>, %27, %cst_15 [1, 2] : vector<1x8x1xf32> to vector<1xf32>
    %29 = vector.shape_cast %28 : vector<1xf32> to vector<1x1x1xf32>
    %30 = vector.extract %29[0, 0, 0] : f32 from vector<1x1x1xf32>
    %31 = vector.broadcast %30 : f32 to vector<1x1xf32>
    %32 = arith.maximumf %26, %31 : vector<1x1xf32>
    %c0_16 = arith.constant 0 : index
    %c0_17 = arith.constant 0 : index
    %33 = vector.load %arg8[%c0_16, %c0_17] : memref<1x32xf32, #tpu.memory_space<vmem>>, vector<1x32xf32>
    %34 = arith.subf %26, %32 : vector<1x1xf32>
    %35 = math.exp %34 : vector<1x1xf32>
    %36 = vector.broadcast %35 : vector<1x1xf32> to vector<1x32xf32>
    %37 = arith.mulf %33, %36 : vector<1x32xf32>
    %38 = vector.broadcast %32 : vector<1x1xf32> to vector<8x1xf32>
    %39 = arith.subf %10, %38 : vector<8x1xf32>
    %40 = math.exp %39 : vector<8x1xf32>
    %41 = vector.broadcast %40 : vector<8x1xf32> to vector<8x32xf32>
    %42 = arith.mulf %13, %41 : vector<8x32xf32>
    %cst_18 = arith.constant dense<0.000000e+00> : vector<32xf32>
    %43 = vector.multi_reduction <add>, %42, %cst_18 [0] : vector<8x32xf32> to vector<32xf32>
    %44 = vector.shape_cast %43 : vector<32xf32> to vector<1x32xf32>
    %45 = arith.addf %37, %44 : vector<1x32xf32>
    %c0_19 = arith.constant 0 : index
    %c0_20 = arith.constant 0 : index
    %46 = vector.load %arg8[%c0_19, %c0_20] : memref<1x32xf32, #tpu.memory_space<vmem>>, vector<1x32xf32>
    tpu.vector_store %arg8[%c0_19, %c0_20], %45 {strides = array<i32>} : memref<1x32xf32, #tpu.memory_space<vmem>>, vector<1x32xf32>,
    %c0_21 = arith.constant 0 : index
    %c0_22 = arith.constant 0 : index
    %47 = vector.load %arg9[%c0_21, %c0_22] : memref<1x1xf32, #tpu.memory_space<vmem>>, vector<1x1xf32>
    tpu.vector_store %arg9[%c0_21, %c0_22], %32 {strides = array<i32>} : memref<1x1xf32, #tpu.memory_space<vmem>>, vector<1x1xf32>,
    %c0_23 = arith.constant 0 : index
    %c0_24 = arith.constant 0 : index
    %48 = vector.load %arg7[%c0_23, %c0_24] : memref<1x32xf32, #tpu.memory_space<vmem>>, vector<1x32xf32>
    %cst_25 = arith.constant dense<0xFF800000> : vector<32xf32>
    %49 = vector.multi_reduction <maximumf>, %8, %cst_25 [0] : vector<8x32xf32> to vector<32xf32>
    %50 = vector.shape_cast %49 : vector<32xf32> to vector<1x32xf32>
    %51 = arith.maximumf %48, %50 : vector<1x32xf32>
    %c0_26 = arith.constant 0 : index
    %c0_27 = arith.constant 0 : index
    %52 = vector.load %arg7[%c0_26, %c0_27] : memref<1x32xf32, #tpu.memory_space<vmem>>, vector<1x32xf32>
    tpu.vector_store %arg7[%c0_26, %c0_27], %51 {strides = array<i32>} : memref<1x32xf32, #tpu.memory_space<vmem>>, vector<1x32xf32>,
    %c4_i32 = arith.constant 4 : i32
    %53 = arith.muli %arg0, %c4_i32 : i32
    %54 = arith.addi %53, %arg1 : i32
    %c8_i32 = arith.constant 8 : i32
    %55 = arith.muli %54, %c8_i32 : i32
    %56 = tpu.iota {dimensions = array<i32: 0>} : vector<8x32xi32>
    %57 = tpu.iota {dimensions = array<i32: 1>} : vector<8x32xi32>
    %c0_28 = arith.constant 0 : index
    %c0_29 = arith.constant 0 : index
    %58 = vector.load %arg11[%c0_28, %c0_29] : memref<1x1xf32, #tpu.memory_space<vmem>>, vector<1x1xf32>
    %59 = vector.broadcast %55 : i32 to vector<8x32xi32>
    %60 = arith.addi %56, %59 : vector<8x32xi32>
    %61 = arith.cmpi eq, %57, %60 : vector<8x32xi32>
    %cst_30 = arith.constant 0.000000e+00 : f32
    %62 = vector.broadcast %cst_30 : f32 to vector<8x32xf32>
    %63 = arith.select %61, %8, %62 : vector<8x32xi1>, vector<8x32xf32>
    %64 = vector.shape_cast %63 : vector<8x32xf32> to vector<1x8x32xf32>
    %cst_31 = arith.constant dense<0.000000e+00> : vector<1xf32>
    %65 = vector.multi_reduction <add>, %64, %cst_31 [1, 2] : vector<1x8x32xf32> to vector<1xf32>
    %66 = vector.shape_cast %65 : vector<1xf32> to vector<1x1x1xf32>
    %67 = vector.extract %66[0, 0, 0] : f32 from vector<1x1x1xf32>
    %68 = vector.broadcast %67 : f32 to vector<1x1xf32>
    %69 = arith.addf %58, %68 : vector<1x1xf32>
    %c0_32 = arith.constant 0 : index
    %c0_33 = arith.constant 0 : index
    %70 = vector.load %arg11[%c0_32, %c0_33] : memref<1x1xf32, #tpu.memory_space<vmem>>, vector<1x1xf32>
    tpu.vector_store %arg11[%c0_32, %c0_33], %69 {strides = array<i32>} : memref<1x1xf32, #tpu.memory_space<vmem>>, vector<1x1xf32>,
    %c3_i32 = arith.constant 3 : i32
    %71 = arith.cmpi eq, %arg1, %c3_i32 : i32
    %72 = arith.extui %71 : i1 to i32
    %c0_i32_34 = arith.constant 0 : i32
    %73 = arith.cmpi ne, %72, %c0_i32_34 : i32
    scf.if %73 {
      %c0_35 = arith.constant 0 : index
      %c0_36 = arith.constant 0 : index
      %74 = vector.load %arg8[%c0_35, %c0_36] : memref<1x32xf32, #tpu.memory_space<vmem>>, vector<1x32xf32>
      %cst_37 = arith.constant 0.000000e+00 : f32
      %75 = vector.broadcast %cst_37 : f32 to vector<1x32xf32>
      %76 = arith.cmpf ogt, %74, %75 : vector<1x32xf32>
      %77 = math.log %74 : vector<1x32xf32>
      %c0_38 = arith.constant 0 : index
      %c0_39 = arith.constant 0 : index
      %78 = vector.load %arg9[%c0_38, %c0_39] : memref<1x1xf32, #tpu.memory_space<vmem>>, vector<1x1xf32>
      %79 = vector.broadcast %78 : vector<1x1xf32> to vector<1x32xf32>
      %80 = arith.addf %77, %79 : vector<1x32xf32>
      %c0_40 = arith.constant 0 : index
      %c0_41 = arith.constant 0 : index
      %81 = vector.load %arg7[%c0_40, %c0_41] : memref<1x32xf32, #tpu.memory_space<vmem>>, vector<1x32xf32>
      %82 = arith.select %76, %80, %81 : vector<1x32xi1>, vector<1x32xf32>
      %83 = vector.shape_cast %82 : vector<1x32xf32> to vector<1x1x32xf32>
      %84 = vector.broadcast %83 : vector<1x1x32xf32> to vector<1x8x32xf32>
      %c0_42 = arith.constant 0 : index
      %c0_43 = arith.constant 0 : index
      %c0_44 = arith.constant 0 : index
      %85 = vector.load %arg5[%c0_42, %c0_43, %c0_44] : memref<1x8x32xf32, #tpu.memory_space<vmem>>, vector<1x8x32xf32>
      tpu.vector_store %arg5[%c0_42, %c0_43, %c0_44], %84 {strides = array<i32>} : memref<1x8x32xf32, #tpu.memory_space<vmem>>, vector<1x8x32xf32>,
      %86 = tpu.iota {dimensions = array<i32: 2>} : vector<1x8x128xi32>
      %c0_i32_45 = arith.constant 0 : i32
      %87 = vector.broadcast %c0_i32_45 : i32 to vector<1x8x128xi32>
      %88 = arith.cmpi eq, %86, %87 : vector<1x8x128xi32>
      %cst_46 = arith.constant 1.000000e+00 : f32
      %cst_47 = arith.constant 0.000000e+00 : f32
      %89 = vector.broadcast %cst_46 : f32 to vector<1x8x128xf32>
      %90 = vector.broadcast %cst_47 : f32 to vector<1x8x128xf32>
      %91 = arith.select %88, %89, %90 : vector<1x8x128xi1>, vector<1x8x128xf32>
      %c0_48 = arith.constant 0 : index
      %c0_49 = arith.constant 0 : index
      %92 = vector.load %arg10[%c0_48, %c0_49] : memref<1x1xf32, #tpu.memory_space<vmem>>, vector<1x1xf32>
      %93 = vector.shape_cast %92 : vector<1x1xf32> to vector<1x1x1xf32>
      %94 = vector.broadcast %93 : vector<1x1x1xf32> to vector<1x8x128xf32>
      %95 = arith.mulf %91, %94 : vector<1x8x128xf32>
      %c1_i32 = arith.constant 1 : i32
      %96 = vector.broadcast %c1_i32 : i32 to vector<1x8x128xi32>
      %97 = arith.cmpi eq, %86, %96 : vector<1x8x128xi32>
      %cst_50 = arith.constant 1.000000e+00 : f32
      %cst_51 = arith.constant 0.000000e+00 : f32
      %98 = vector.broadcast %cst_50 : f32 to vector<1x8x128xf32>
      %99 = vector.broadcast %cst_51 : f32 to vector<1x8x128xf32>
      %100 = arith.select %97, %98, %99 : vector<1x8x128xi1>, vector<1x8x128xf32>
      %c0_52 = arith.constant 0 : index
      %c0_53 = arith.constant 0 : index
      %101 = vector.load %arg11[%c0_52, %c0_53] : memref<1x1xf32, #tpu.memory_space<vmem>>, vector<1x1xf32>
      %102 = vector.shape_cast %101 : vector<1x1xf32> to vector<1x1x1xf32>
      %103 = vector.broadcast %102 : vector<1x1x1xf32> to vector<1x8x128xf32>
      %104 = arith.mulf %100, %103 : vector<1x8x128xf32>
      %105 = arith.addf %95, %104 : vector<1x8x128xf32>
      %c0_54 = arith.constant 0 : index
      %c0_55 = arith.constant 0 : index
      %c0_56 = arith.constant 0 : index
      %106 = vector.load %arg6[%c0_54, %c0_55, %c0_56] : memref<1x8x128xf32, #tpu.memory_space<vmem>>, vector<1x8x128xf32>
      tpu.vector_store %arg6[%c0_54, %c0_55, %c0_56], %105 {strides = array<i32>} : memref<1x8x128xf32, #tpu.memory_space<vmem>>, vector<1x8x128xf32>,
    } else {
    }
    return
  }
  func.func @transform_0(%arg0: i32, %arg1: i32) -> (i32, i32) {
    %c0_i32 = arith.constant 0 : i32
    %c0_i32_0 = arith.constant 0 : i32
    %c0_i32_1 = arith.constant 0 : i32
    return %c0_i32, %c0_i32_0 : i32, i32
  }
  func.func @transform_1(%arg0: i32, %arg1: i32) -> (i32, i32) {
    %c4_i32 = arith.constant 4 : i32
    %0 = arith.muli %arg0, %c4_i32 : i32
    %1 = arith.addi %0, %arg1 : i32
    %c0_i32 = arith.constant 0 : i32
    %c0_i32_0 = arith.constant 0 : i32
    return %1, %c0_i32 : i32, i32
  }
  func.func @transform_2(%arg0: i32, %arg1: i32) -> (i32, i32) {
    %c0_i32 = arith.constant 0 : i32
    %c0_i32_0 = arith.constant 0 : i32
    %c0_i32_1 = arith.constant 0 : i32
    return %c0_i32, %c0_i32_0 : i32, i32
  }
  func.func @transform_3(%arg0: i32, %arg1: i32) -> (i32, i32, i32) {
    %c0_i32 = arith.constant 0 : i32
    %c0_i32_0 = arith.constant 0 : i32
    %c0_i32_1 = arith.constant 0 : i32
    return %arg0, %c0_i32, %c0_i32_0 : i32, i32, i32
  }
  func.func @transform_4(%arg0: i32, %arg1: i32) -> (i32, i32, i32) {
    %c0_i32 = arith.constant 0 : i32
    %c0_i32_0 = arith.constant 0 : i32
    %c0_i32_1 = arith.constant 0 : i32
    return %arg0, %c0_i32, %c0_i32_0 : i32, i32, i32
  }
}

</mosaic_0001>

<bundles_post_ra>
// kernel: tpu_custom_call.1
= control target key start
LH: loop header
LB: loop body
LE: loop exit
PB: predicated region body
PF: predicated region fallthrough
CT: control target
= control target key end

     0   :  { %s992_s0 = inlined_call_operand.<no memory space> [shape: f32[1,1], index: 0, kind: input, shape index: {}]   ;;  %s993_s1 = inlined_call_operand.vmem [shape: bf16[32,128], index: 1, kind: input, shape index: {}]   ;;  %s994_s2 = inlined_call_operand.vmem [shape: bf16[128,32], index: 2, kind: input, shape index: {}]   ;;  %s995_s3 = inlined_call_operand.hbm [shape: f32[1,8,32], index: 3, kind: output, shape index: {0}]   ;;  %s996_s4 = inlined_call_operand.hbm [shape: f32[1,8,128], index: 4, kind: output, shape index: {1}]  }
   0x1   :  { %10 = sst [smem:[#allocation7]] %s992_s0 }
   0x2   :  { %11 = vsyncpa [#allocation9], 0 }
   0x3   :  { %12 = vsyncpa [#allocation11], 0  ;;  %s838_s17 = smov 0   ;;  %s840_s18 = smov 0  }
   0x4   :  { %s842_s19 = smov 0  }
   0x5 LB: > { %s591_s0 = sadd.s32 4294967295, %s799_s19   ;;  %s27_s20 = sadd.s32 1, %s795_s18  ;;  %s799_s19 = sphi %s842_s19, %s18_s19   ;;  %s795_s18 = sphi %s840_s18, %s999_s18   ;;  %s791_s17 = sphi %s838_s17, %s998_s17  }
   0x6   : > { %p28_p0 = scmp.ge.s32.totalorder %s27_s20, 4  ;;  %p594_p1 = scmp.ge.s32.totalorder %s799_s19, 1 }
   0x7   : > { %p187_p2 = scmp.lt.s32.totalorder %s799_s19, 5 }
   0x8   : > { %s1001_s20 = smov (%p28_p0, %s27_s20), 0 }
   0x9   : > { %p188_p3 = pnand %p594_p1, %p187_p2 }
   0xa   : > { %p211_p4 = scmp.lt.s32.totalorder (!%p188_p3), %s791_s17, 3  ;;  %p596_p5 = scmp.ne.s32.totalorder (!%p188_p3), %s791_s17, 0 }
   0xb   : > { %191 = sbr.rel (%p188_p3) target bundleno = 1129 (0x469), region = 32 }
  0x12   : > { %s212_s21 = scalar_select %p211_p4, %s791_s17, 3 }
  0x13   : > { %221 = sbr.rel (%p596_p5) target bundleno = 26 (0x1a), region = 36  ;;  %vm222_vm0 = vcmask (!%p596_p5), 253952   ;;  %vm225_vm1 = vcmask (!%p596_p5), 0   ;;  %v801_v0 = vmov (!%p596_p5), -inf   ;;  %v802_v1 = vmov (!%p596_p5), 0.0  }
  0x14   : > { %s595_s22 = sshll.u32 %s212_s21, 2  ;;  %223 = vst.msk [vmem:[#allocation2] sm:$0x1] (!%p596_p5), %vm222_vm0, %v801_v0  ;;  %224 = vst.msk [vmem:[#allocation3] sm:$0x1] (!%p596_p5), %vm222_vm0, %v802_v1 }
  0x15   : > { %s864_s25 = scalar_lea.vmem %s993_s1, %s595_s22  ;;  %226 = vst.msk [vmem:[#allocation4] sm:$0x1] (!%p596_p5), %vm225_vm1, %v801_v0  ;;  %227 = vst.msk [vmem:[#allocation5] sm:$0x1] (!%p596_p5), %vm225_vm1, %v802_v1 }
  0x16   : > { %228 = vst.msk [vmem:[#allocation6] sm:$0x1] (!%p596_p5), %vm225_vm1, %v802_v1 }
  0x1a PF: > { %v697_v2 = vld [vmem:[%s994_s2] sm:$0xff]   ;;  %v803_v3 = vmov 0.0   ;;  %v698_v4 = vld [vmem:[%s994_s2 + $0x8] sm:$0xff]   ;;  %vm804_vm2 = vmmov 0   ;;  %v699_v5 = vld [vmem:[%s994_s2 + $0x10] sm:$0xff]   ;;  %s229_s16 = sld [smem:[#allocation7]]  ;;  %v385_v33 = vlaneseq }
  0x1b   : > { %624 = vmatprep.subr.bf16.mxu0 %v803_v3  ;;  %640 = vmatprep.mubr.msk.bf16.mxu0 %vm804_vm2, %v803_v3  ;;  %v700_v6 = vld [vmem:[%s994_s2 + $0x18] sm:$0xff]   ;;  %v701_v7 = vld [vmem:[%s994_s2 + $0x20] sm:$0xff]   ;;  %v702_v8 = vld [vmem:[%s994_s2 + $0x28] sm:$0xff]   ;;  %vm337_vm3 = vcmask 261120   ;;  %vm413_vm4 = vcmask 253952   ;;  %s605_s21 = sshll.u32 %s791_s17, 3 }
  0x1c   : > { %625 = vmatpush3.bf16.msra.mxu0 %v697_v2  ;;  %v703_v9 = vld [vmem:[%s994_s2 + $0x30] sm:$0xff]   ;;  %v704_v10 = vld [vmem:[%s994_s2 + $0x38] sm:$0xff]   ;;  %v230_v11 = vld [vmem:[%s864_s25] sm:$0xf]  ;;  %v386_v34 = vshrl.u32 %v385_v33, 7  ;;  %v433_v35 = vstv %s605_s21  ;;  %v902_v36 = vand.u32 127, %v385_v33 }
  0x1d   : > { %626 = vmatprep.subr.bf16.mxu0 %v803_v3  ;;  %v416_v24 = vld [vmem:[#allocation2] sm:$0x1]  ;;  %vm351_vm5 = vcmask 7168   ;;  %v805_v44 = vmov 0   ;;  %v344_v1 = vld [vmem:[#allocation5] sm:$0x1] }
  0x1e   : > { %v434_v37 = vadd.s32 %v433_v35, %v386_v34  ;;  %696 = vset.pattern.permute.xlu1 %v805_v44  ;;  %695 = vset.pattern.permute.xlu0 %v805_v44  ;;  %v366_v2 = vld [vmem:[#allocation4] sm:$0x1]  ;;  %vm364_vm7 = vcmask 0   ;;  %p606_p6 = scmp.ne.s32.totalorder %s791_s17, 3 }
  0x1f   : > { %vm491_vm8 = vcmp.eq.s32.totalorder (!%p606_p6), %v902_v36, 1  ;;  %vm478_vm9 = vcmp.eq.s32.totalorder (!%p606_p6), %v902_v36, 0 }
  0x20   : > { %627 = vmatpush3.bf16.msra.mxu0 %v698_v4  ;;  %v335_v12 = vstv %s229_s16  ;;  %vm435_vm6 = vcmp.eq.s32.totalorder %v902_v36, %v434_v37  ;;  %v909_v4 = vsub.s32 0, %v386_v34  ;;  %v806_v34 = vmov (!%p606_p6), 0  }
  0x21   : > { %628 = vmatprep.subr.bf16.mxu0 %v803_v3 }
  0x24   : > { %629 = vmatpush3.bf16.msra.mxu0 %v699_v5 }
  0x25   : > { %630 = vmatprep.subr.bf16.mxu0 %v803_v3 }
  0x28   : > { %631 = vmatpush3.bf16.msra.mxu0 %v700_v6 }
  0x29   : > { %632 = vmatprep.subr.bf16.mxu0 %v803_v3 }
  0x2c   : > { %633 = vmatpush3.bf16.msra.mxu0 %v701_v7 }
  0x2d   : > { %634 = vmatprep.subr.bf16.mxu0 %v803_v3 }
  0x30   : > { %635 = vmatpush3.bf16.msra.mxu0 %v702_v8  ;;  %v432_v8 = vld [vmem:[#allocation6] sm:$0x1] }
  0x31   : > { %636 = vmatprep.subr.bf16.mxu0 %v803_v3 }
  0x34   : > { %637 = vmatpush3.bf16.msra.mxu0 %v703_v9 }
  0x35   : > { %638 = vmatprep.subr.bf16.mxu0 %v803_v3 }
  0x38   : > { %639 = vmatpush3.bf16.msra.mxu0 %v704_v10 }
  0x3b   : > { %641 = vmatmul.mubr.bf16.vlgmr.msra.gmra.mrb[0].mxu0 %v230_v11 }
 0x10e   : > { %v329_v13 = vpop.f32.mrb[0].mxu0 }
 0x10f   : > { %v336_v14 = vmul.f32 %v335_v12, %v329_v13  ;;  %v642_v15 = vpop.f32.mrb[1].mxu0 }
 0x110   : > { %v332_v16 = vpop.f32.mrb[2].mxu0 }
 0x111   : > { %v643_v17 = vpop.f32.mrb[3].mxu0  ;;  %v338_v18 = vsel %vm337_vm3, %v336_v14, -inf  ;;  %v436_v42 = vsel %vm435_vm6, %v336_v14, 0.0 }
 0x112   : > { %339 = vmax.xlane.f32.xlu0 %v338_v18  ;;  %v417_v19 = vrot.slane %v338_v18, 4  ;;  %v437_v43 = vsel %vm337_vm3, %v436_v42, 0.0 }
 0x114   : > { %v418_v20 = vmax.f32 %v338_v18, %v417_v19 }
 0x116   : > { %v419_v21 = vrot.slane %v418_v20, 2 }
 0x118   : > { %v420_v22 = vmax.f32 %v418_v20, %v419_v21 }
 0x11a   : > { %v421_v23 = vrot.slane %v420_v22, 1 }
 0x11c   : > { %v422_v25 = vmax.f32 %v420_v22, %v421_v23 }
 0x11e   : > { %v423_v26 = vmax.f32 %v416_v24, %v422_v25 }
 0x120   : > { %424 = vst.msk [vmem:[#allocation2] sm:$0x1] %vm413_vm4, %v423_v26 }
 0x19f   : > { %v894_v27 = vpop.xlane.xlu0 %339 }
 0x1a0   : > { %v341_v28 = vsub.f32 %v336_v14, %v894_v27  ;;  %v367_v45 = vrot.slane %v894_v27, 4 }
 0x1a2   : > { %v342_v29 = vmul.f32 1.442695, %v341_v28  ;;  %v368_v46 = vmax.f32 %v894_v27, %v367_v45  ;;  %v469_v45 = vld [vmem:[#allocation2] sm:$0x1] (!%p606_p6) }
 0x1a4   : > { %705 = vpow2.f32 %v342_v29  ;;  %v369_v48 = vrot.slane %v368_v46, 2 }
 0x1a6   : > { %v370_v52 = vmax.f32 %v368_v46, %v369_v48 }
 0x1a8   : > { %v371_v57 = vrot.slane %v370_v52, 1 }
 0x1aa   : > { %v372_v62 = vmax.f32 %v370_v52, %v371_v57 }
 0x1ae   : > { %v897_v30 = vpop.eup %705 }
 0x1af   : > { %v345_v31 = vsel %vm337_vm3, %v897_v30, 0.0 }
 0x1b0   : > { %346 = vadd.xlane.f32.xlu0 %v345_v31 }
 0x23d   : > { %v347_v32 = vpop.xlane.xlu0 %346 }
 0x23e   : > { %707 = vlog2.f32 %v347_v32 }
 0x248   : > { %v708_v38 = vpop.eup %707 }
 0x249   : > { %v349_v39 = vmul.f32 0.6931472, %v708_v38 }
 0x24b   : > { %v350_v40 = vadd.f32 %v349_v39, %v894_v27 }
 0x24d   : > { %v352_v41 = vsel %vm351_vm5, %v350_v40, 0.0 }
 0x24e   : > { %353 = vadd.xlane.f32.xlu1 %v352_v41  ;;  %v807_v41 = vmov (!%p606_p6), 0.0  }
 0x24f   : > { %v492_v42 = vsel (!%p606_p6), %vm491_vm8, 1.0, %v807_v41  ;;  %v479_v46 = vsel (!%p606_p6), %vm478_vm9, 1.0, %v807_v41 }
 0x252   : > { %438 = vadd.xlane.f32.xlu1 %v437_v43 }
 0x2db   : > { %v354_v47 = vpop.xlane.xlu1 %353 }
 0x2dc   : > { %v355_v49 = vrot.slane %v354_v47, 4 }
 0x2de   : > { %v356_v50 = vadd.f32 %v355_v49, %v354_v47 }
 0x2df   : > { %v439_v51 = vpop.xlane.xlu1 %438 }
 0x2e0   : > { %v357_v53 = vrot.slane %v356_v50, 2  ;;  %v440_v54 = vrot.slane %v439_v51, 4 }
 0x2e2   : > { %v441_v55 = vadd.f32 %v440_v54, %v439_v51  ;;  %v358_v56 = vadd.f32 %v357_v53, %v356_v50 }
 0x2e4   : > { %v442_v58 = vrot.slane %v441_v55, 2  ;;  %v359_v59 = vrot.slane %v358_v56, 1 }
 0x2e6   : > { %v360_v60 = vadd.f32 %v359_v59, %v358_v56  ;;  %v443_v61 = vadd.f32 %v442_v58, %v441_v55 }
 0x2e8   : > { %644 = vpush %v360_v60  ;;  %v444_v63 = vrot.slane %v443_v61, 1 }
 0x2e9   : > { %646 = vpush %v372_v62 }
 0x2ea   : > { %v445_v0 = vadd.f32 %v444_v63, %v443_v61 }
 0x2ec   : > { %648 = vpush %v445_v0 }
 0x319   : > { %s645_s22 = spop %644 }
 0x31a   : > { %v362_v3 = vstv %s645_s22  ;;  %s647_s23 = spop %646 }
 0x31b   : > { %v363_v5 = vadd.f32 %v362_v3, %v344_v1  ;;  %v374_v6 = vstv %s647_s23 }
 0x31c   : > { %v375_v7 = vmax.f32 %v366_v2, %v374_v6 }
 0x31d   : > { %365 = vst.msk [vmem:[#allocation5] sm:$0x1] %vm364_vm7, %v363_v5  ;;  %s649_s24 = spop %648 }
 0x31e   : > { %v377_v9 = vsub.f32 %v366_v2, %v375_v7  ;;  %v394_v10 = vrot.slane %v375_v7, %v909_v4  ;;  %415 = vst.msk [vmem:[#allocation4] sm:$0x1] %vm364_vm7, %v375_v7  ;;  %v447_v11 = vstv %s649_s24 }
 0x31f   : > { %v448_v12 = vadd.f32 %v447_v11, %v432_v8 }
 0x320   : > { %v378_v13 = vmul.f32 1.442695, %v377_v9  ;;  %v396_v14 = vsub.f32 %v894_v27, %v394_v10  ;;  %v376_v27 = vld [vmem:[#allocation3] sm:$0x1] }
 0x321   : > { %449 = vst.msk [vmem:[#allocation6] sm:$0x1] %vm364_vm7, %v448_v12 }
 0x322   : > { %709 = vpow2.f32 %v378_v13  ;;  %v397_v15 = vmul.f32 1.442695, %v396_v14 }
 0x324   : > { %711 = vpow2.f32 %v397_v15  ;;  %v607_v35 = vld [vmem:[#allocation5] ss:$0 sm:$0xff] (!%p606_p6) }
 0x328   : > { %v608_v33 = vld [vmem:[#allocation6] ss:$0 sm:$0xff] (!%p606_p6) }
 0x32c   : > { %v710_v16 = vpop.eup %709 }
 0x32d   : > { %382 = vperm.xlu1 %696, %v710_v16  }
 0x32e   : > { %v712_v17 = vpop.eup %711 }
 0x32f   : > { %401 = vperm.xlu0 %695, %v712_v17  }
 0x331   : > { %714 = vset.pattern.permute.xlu1 (!%p606_p6), %v806_v34 }
 0x332   : > { %500 = vperm.xlu1 (!%p606_p6), %714, %v608_v33  }
 0x333   : > { %713 = vset.pattern.permute.xlu0 (!%p606_p6), %v806_v34 }
 0x3ac   : > { %v383_v23 = vpop.permute.xlu1 %382 }
 0x3ad   : > { %v388_v25 = vrot.slane %v383_v23, %v909_v4 }
 0x3ae   : > { %v402_v18 = vpop.permute.xlu0 %401 }
 0x3af   : > { %v404_v19 = vmul.f32 %v897_v30, %v402_v18  ;;  %v389_v29 = vmul.f32 %v388_v25, %v376_v27  ;;  %v458_v30 = vld [vmem:[#allocation4] sm:$0x1] (!%p606_p6) }
 0x3b0   : > { %461 = vperm.xlu0 (!%p606_p6), %713, %v458_v30  }
 0x3b1   : > { %v405_v20 = vsel %vm337_vm3, %v404_v19, 0.0  ;;  %v501_v43 = vpop.permute.xlu1 (!%p606_p6), %500 }
 0x3b2   : > { %v406_v21 = vrot.slane %v405_v20, 4  ;;  %v503_v48 = vmul.f32 (!%p606_p6), %v501_v43, %v492_v42 }
 0x3b4   : > { %v407_v22 = vadd.f32 %v406_v21, %v405_v20  ;;  %487 = vperm.xlu0 (!%p606_p6), %713, %v607_v35  }
 0x3b6   : > { %v408_v24 = vrot.slane %v407_v22, 2 }
 0x3b8   : > { %v409_v26 = vadd.f32 %v408_v24, %v407_v22 }
 0x3ba   : > { %v410_v28 = vrot.slane %v409_v26, 1  ;;  %453 = sbr.rel (%p606_p6) target bundleno = 1081 (0x439), region = 40 }
 0x3bc   : > { %v411_v31 = vadd.f32 %v410_v28, %v409_v26 }
 0x3be   : > { %v412_v32 = vadd.f32 %v411_v31, %v389_v29 }
 0x3c0   : > { %414 = vst.msk [vmem:[#allocation3] sm:$0x1] %vm413_vm4, %v412_v32 }
 0x3c7   : > { %v454_v37 = vld [vmem:[#allocation3] sm:$0x1] }
 0x3c8   : > { %715 = vlog2.f32 %v454_v37  ;;  %vm455_vm10 = vcmp.gt.f32.partialorder %v454_v37, 0.0 }
 0x3d2   : > { %v716_v38 = vpop.eup %715 }
 0x3d3   : > { %v457_v39 = vmul.f32 0.6931472, %v716_v38 }
 0x42f   : > { %v462_v40 = vpop.permute.xlu0 %461 }
 0x430   : > { %v467_v44 = vrot.slane %v462_v40, %v909_v4 }
 0x432   : > { %v468_v47 = vadd.f32 %v467_v44, %v457_v39 }
 0x433   : > { %v488_v49 = vpop.permute.xlu0 %487 }
 0x434   : > { %v470_v50 = vsel %vm455_vm10, %v468_v47, %v469_v45  ;;  %v490_v51 = vmul.f32 %v488_v49, %v479_v46 }
 0x435   : > { %v475_v52 = vrot.slane %v470_v50, %v909_v4 }
 0x436   : > { %v504_v53 = vadd.f32 %v503_v48, %v490_v51 }
 0x437   : > { %477 = vst.msk [vmem:[#allocation8] sm:$0xff] %vm337_vm3, %v475_v52 }
 0x438   : > { %505 = vst [vmem:[#allocation10] sm:$0xff] %v504_v53 }
 0x439 PF: > { %p928_p7 = scmp.eq.s32.totalorder %s591_s0, 3  ;;  %s808_s25 = smov [#allocation8]  }
 0x43a   : > { %s515_s26 = sshll.u32 %s808_s25, 4  ;;  %s809_s27 = smov [#allocation10]   ;;  %s516_s26 = int_to_ptr.vmem [resolvable:$true] %s515_s26 }
 0x43b   : > { %s528_s28 = sshll.u32 %s809_s27, 4  ;;  %s717_s29 = scalar_lea.vmem %s516_s26, 128  ;;  %s932_s28 = int_to_ptr.vmem [resolvable:$true] %s528_s28 }
 0x43c   : > { %p718_p8 = scmp.ne.s32.totalorder %s516_s26, %s717_s29  ;;  %p724_p11 = scmp.lt.s32.totalorder %s516_s26, %s516_s26 }
 0x43d   : > { %p725_p12 = scmp.lt.s32.totalorder %s717_s29, %s717_s29 }
 0x43e   : > { %p719_p9 = pnand %p718_p8, %p928_p7 }
 0x43f   : > { %p726_p13 = por %p725_p12, %p724_p11 }
 0x440   : > { %p720_p10 = pneg %p719_p9 }
 0x442   : > { %p727_p0 = pnand %p726_p13, %p720_p10 }
 0x444   : > { %730 = shalt.err (!%p727_p0)
}
 0x445   : > { %s731_s5 = scalar_lea.hbm %s995_s3, 128 }
 0x446   : > { %p732_p1 = scmp.ne.s32.totalorder %s995_s3, %s731_s5  ;;  %p737_p4 = scmp.lt.u32.totalorder %s731_s5, %s995_s3 }
 0x448   : > { %p733_p2 = pnand %p732_p1, %p928_p7 }
 0x44a   : > { %p734_p3 = pneg %p733_p2 }
 0x44c   : > { %p739_p5 = pnand %p737_p4, %p734_p3 }
 0x44e   : > { %742 = shalt.err (!%p739_p5)
}
 0x44f   : > { %651 = dma.vmem_to_hbm [thread:$0]  (%p928_p7), %s516_s26, 128, %s995_s3, [#allocation9]  }
 0x450   : > { %s743_s12 = scalar_lea.vmem %s932_s28, 128  ;;  %p750_p10 = scmp.lt.s32.totalorder %s932_s28, %s932_s28 }
 0x451   : > { %p744_p6 = scmp.ne.s32.totalorder %s932_s28, %s743_s12  ;;  %p751_p11 = scmp.lt.s32.totalorder %s743_s12, %s743_s12 }
 0x453   : > { %p745_p8 = pnand %p744_p6, %p928_p7  ;;  %p752_p12 = por %p751_p11, %p750_p10 }
 0x455   : > { %p746_p9 = pneg %p745_p8 }
 0x457   : > { %p753_p13 = pnand %p752_p12, %p746_p9 }
 0x459   : > { %756 = shalt.err (!%p753_p13)
}
 0x45a   : > { %s757_s15 = scalar_lea.hbm %s996_s4, 128 }
 0x45b   : > { %p758_p0 = scmp.ne.s32.totalorder %s996_s4, %s757_s15  ;;  %p763_p3 = scmp.lt.u32.totalorder %s757_s15, %s996_s4 }
 0x45d   : > { %p759_p1 = pnand %p758_p0, %p928_p7 }
 0x45f   : > { %p760_p2 = pneg %p759_p1 }
 0x461   : > { %p765_p4 = pnand %p763_p3, %p760_p2 }
 0x463   : > { %768 = shalt.err (!%p765_p4)
}
 0x464   : > { %653 = dma.vmem_to_hbm [thread:$0]  (%p928_p7), %s932_s28, 128, %s996_s4, [#allocation11]  }
 0x465   : > { %782 = dma.done.wait (%p928_p7), [#allocation9], 128  }
 0x466   : > { %784 = vsyncadd (%p928_p7), [#allocation9], 4294967168 }
 0x467   : > { %786 = dma.done.wait (%p928_p7), [#allocation11], 128  }
 0x468   : > { %788 = vsyncadd (%p928_p7), [#allocation11], 4294967168 }
 0x469 PF: > { %s18_s19 = sadd.s32 1, %s799_s19   ;;  %s998_s17 = smov %s795_s18 }
 0x46a   : > { %p15_p5 = scmp.ge.s32.totalorder %s18_s19, 6   ;;  %s999_s18 = smov %s1001_s20 }
 0x46c   :  { %17 = sbr.rel (!%p15_p5) target bundleno = 5 (0x5), region = 77 }
 0x473   :  { %545 = vsyncpa [#allocation9], 1 }
 0x474   :  { %547 = vsyncpa [#allocation9 + $0x1], 1 }
 0x475   :  { %548 = vsyncpa [#allocation11], 1 }

// kernel: tpu_custom_call.1
= control target key start
LH: loop header
LB: loop body
LE: loop exit
PB: predicated region body
PF: predicated region fallthrough
CT: control target
= control target key end

     0   :  { %s992_s0 = inlined_call_operand.<no memory space> [shape: f32[1,1], index: 0, kind: input, shape index: {}]   ;;  %s993_s1 = inlined_call_operand.vmem [shape: bf16[32,128], index: 1, kind: input, shape index: {}]   ;;  %s994_s2 = inlined_call_operand.vmem [shape: bf16[128,32], index: 2, kind: input, shape index: {}]   ;;  %s995_s3 = inlined_call_operand.hbm [shape: f32[1,8,32], index: 3, kind: output, shape index: {0}]   ;;  %s996_s4 = inlined_call_operand.hbm [shape: f32[1,8,128], index: 4, kind: output, shape index: {1}]  }
   0x1   :  { %10 = sst [smem:[#allocation7]] %s992_s0 }
   0x2   :  { %11 = vsyncpa [#allocation9], 0 }
   0x3   :  { %12 = vsyncpa [#allocation11], 0  ;;  %s838_s17 = smov 0   ;;  %s840_s18 = smov 0  }
   0x4   :  { %s842_s19 = smov 0  }
   0x5 LB: > { %s591_s0 = sadd.s32 4294967295, %s799_s19   ;;  %s27_s20 = sadd.s32 1, %s795_s18  ;;  %s799_s19 = sphi %s842_s19, %s18_s19   ;;  %s795_s18 = sphi %s840_s18, %s999_s18   ;;  %s791_s17 = sphi %s838_s17, %s998_s17  }
   0x6   : > { %p28_p0 = scmp.ge.s32.totalorder %s27_s20, 4  ;;  %p594_p1 = scmp.ge.s32.totalorder %s799_s19, 1 }
   0x7   : > { %p187_p2 = scmp.lt.s32.totalorder %s799_s19, 5 }
   0x8   : > { %s1001_s20 = smov (%p28_p0, %s27_s20), 0 }
   0x9   : > { %p188_p3 = pnand %p594_p1, %p187_p2 }
   0xa   : > { %p211_p4 = scmp.lt.s32.totalorder (!%p188_p3), %s791_s17, 3  ;;  %p596_p5 = scmp.ne.s32.totalorder (!%p188_p3), %s791_s17, 0 }
   0xb   : > { %191 = sbr.rel (%p188_p3) target bundleno = 1129 (0x469), region = 32 }
  0x12   : > { %s212_s21 = scalar_select %p211_p4, %s791_s17, 3 }
  0x13   : > { %221 = sbr.rel (%p596_p5) target bundleno = 26 (0x1a), region = 36  ;;  %vm222_vm0 = vcmask (!%p596_p5), 253952   ;;  %vm225_vm1 = vcmask (!%p596_p5), 0   ;;  %v801_v0 = vmov (!%p596_p5), -inf   ;;  %v802_v1 = vmov (!%p596_p5), 0.0  }
  0x14   : > { %s595_s22 = sshll.u32 %s212_s21, 2  ;;  %223 = vst.msk [vmem:[#allocation2] sm:$0x1] (!%p596_p5), %vm222_vm0, %v801_v0  ;;  %224 = vst.msk [vmem:[#allocation3] sm:$0x1] (!%p596_p5), %vm222_vm0, %v802_v1 }
  0x15   : > { %s864_s25 = scalar_lea.vmem %s993_s1, %s595_s22  ;;  %226 = vst.msk [vmem:[#allocation4] sm:$0x1] (!%p596_p5), %vm225_vm1, %v801_v0  ;;  %227 = vst.msk [vmem:[#allocation5] sm:$0x1] (!%p596_p5), %vm225_vm1, %v802_v1 }
  0x16   : > { %228 = vst.msk [vmem:[#allocation6] sm:$0x1] (!%p596_p5), %vm225_vm1, %v802_v1 }
  0x1a PF: > { %v697_v2 = vld [vmem:[%s994_s2] sm:$0xff]   ;;  %v803_v3 = vmov 0.0   ;;  %v698_v4 = vld [vmem:[%s994_s2 + $0x8] sm:$0xff]   ;;  %vm804_vm2 = vmmov 0   ;;  %v699_v5 = vld [vmem:[%s994_s2 + $0x10] sm:$0xff]   ;;  %s229_s16 = sld [smem:[#allocation7]]  ;;  %v385_v33 = vlaneseq }
  0x1b   : > { %624 = vmatprep.subr.bf16.mxu0 %v803_v3  ;;  %640 = vmatprep.mubr.msk.bf16.mxu0 %vm804_vm2, %v803_v3  ;;  %v700_v6 = vld [vmem:[%s994_s2 + $0x18] sm:$0xff]   ;;  %v701_v7 = vld [vmem:[%s994_s2 + $0x20] sm:$0xff]   ;;  %v702_v8 = vld [vmem:[%s994_s2 + $0x28] sm:$0xff]   ;;  %vm337_vm3 = vcmask 261120   ;;  %vm413_vm4 = vcmask 253952   ;;  %s605_s21 = sshll.u32 %s791_s17, 3 }
  0x1c   : > { %625 = vmatpush3.bf16.msra.mxu0 %v697_v2  ;;  %v703_v9 = vld [vmem:[%s994_s2 + $0x30] sm:$0xff]   ;;  %v704_v10 = vld [vmem:[%s994_s2 + $0x38] sm:$0xff]   ;;  %v230_v11 = vld [vmem:[%s864_s25] sm:$0xf]  ;;  %v386_v34 = vshrl.u32 %v385_v33, 7  ;;  %v433_v35 = vstv %s605_s21  ;;  %v902_v36 = vand.u32 127, %v385_v33 }
  0x1d   : > { %626 = vmatprep.subr.bf16.mxu0 %v803_v3  ;;  %v416_v24 = vld [vmem:[#allocation2] sm:$0x1]  ;;  %vm351_vm5 = vcmask 7168   ;;  %v805_v44 = vmov 0   ;;  %v344_v1 = vld [vmem:[#allocation5] sm:$0x1] }
  0x1e   : > { %v434_v37 = vadd.s32 %v433_v35, %v386_v34  ;;  %696 = vset.pattern.permute.xlu1 %v805_v44  ;;  %695 = vset.pattern.permute.xlu0 %v805_v44  ;;  %v366_v2 = vld [vmem:[#allocation4] sm:$0x1]  ;;  %vm364_vm7 = vcmask 0   ;;  %p606_p6 = scmp.ne.s32.totalorder %s791_s17, 3 }
  0x1f   : > { %vm491_vm8 = vcmp.eq.s32.totalorder (!%p606_p6), %v902_v36, 1  ;;  %vm478_vm9 = vcmp.eq.s32.totalorder (!%p606_p6), %v902_v36, 0 }
  0x20   : > { %627 = vmatpush3.bf16.msra.mxu0 %v698_v4  ;;  %v335_v12 = vstv %s229_s16  ;;  %vm435_vm6 = vcmp.eq.s32.totalorder %v902_v36, %v434_v37  ;;  %v909_v4 = vsub.s32 0, %v386_v34  ;;  %v806_v34 = vmov (!%p606_p6), 0  }
  0x21   : > { %628 = vmatprep.subr.bf16.mxu0 %v803_v3 }
  0x24   : > { %629 = vmatpush3.bf16.msra.mxu0 %v699_v5 }
  0x25   : > { %630 = vmatprep.subr.bf16.mxu0 %v803_v3 }
  0x28   : > { %631 = vmatpush3.bf16.msra.mxu0 %v700_v6 }
  0x29   : > { %632 = vmatprep.subr.bf16.mxu0 %v803_v3 }
  0x2c   : > { %633 = vmatpush3.bf16.msra.mxu0 %v701_v7 }
  0x2d   : > { %634 = vmatprep.subr.bf16.mxu0 %v803_v3 }
  0x30   : > { %635 = vmatpush3.bf16.msra.mxu0 %v702_v8  ;;  %v432_v8 = vld [vmem:[#allocation6] sm:$0x1] }
  0x31   : > { %636 = vmatprep.subr.bf16.mxu0 %v803_v3 }
  0x34   : > { %637 = vmatpush3.bf16.msra.mxu0 %v703_v9 }
  0x35   : > { %638 = vmatprep.subr.bf16.mxu0 %v803_v3 }
  0x38   : > { %639 = vmatpush3.bf16.msra.mxu0 %v704_v10 }
  0x3b   : > { %641 = vmatmul.mubr.bf16.vlgmr.msra.gmra.mrb[0].mxu0 %v230_v11 }
 0x10e   : > { %v329_v13 = vpop.f32.mrb[0].mxu0 }
 0x10f   : > { %v336_v14 = vmul.f32 %v335_v12, %v329_v13  ;;  %v642_v15 = vpop.f32.mrb[1].mxu0 }
 0x110   : > { %v332_v16 = vpop.f32.mrb[2].mxu0 }
 0x111   : > { %v643_v17 = vpop.f32.mrb[3].mxu0  ;;  %v338_v18 = vsel %vm337_vm3, %v336_v14, -inf  ;;  %v436_v42 = vsel %vm435_vm6, %v336_v14, 0.0 }
 0x112   : > { %339 = vmax.xlane.f32.xlu0 %v338_v18  ;;  %v417_v19 = vrot.slane %v338_v18, 4  ;;  %v437_v43 = vsel %vm337_vm3, %v436_v42, 0.0 }
 0x114   : > { %v418_v20 = vmax.f32 %v338_v18, %v417_v19 }
 0x116   : > { %v419_v21 = vrot.slane %v418_v20, 2 }
 0x118   : > { %v420_v22 = vmax.f32 %v418_v20, %v419_v21 }
 0x11a   : > { %v421_v23 = vrot.slane %v420_v22, 1 }
 0x11c   : > { %v422_v25 = vmax.f32 %v420_v22, %v421_v23 }
 0x11e   : > { %v423_v26 = vmax.f32 %v416_v24, %v422_v25 }
 0x120   : > { %424 = vst.msk [vmem:[#allocation2] sm:$0x1] %vm413_vm4, %v423_v26 }
 0x19f   : > { %v894_v27 = vpop.xlane.xlu0 %339 }
 0x1a0   : > { %v341_v28 = vsub.f32 %v336_v14, %v894_v27  ;;  %v367_v45 = vrot.slane %v894_v27, 4 }
 0x1a2   : > { %v342_v29 = vmul.f32 1.442695, %v341_v28  ;;  %v368_v46 = vmax.f32 %v894_v27, %v367_v45  ;;  %v469_v45 = vld [vmem:[#allocation2] sm:$0x1] (!%p606_p6) }
 0x1a4   : > { %705 = vpow2.f32 %v342_v29  ;;  %v369_v48 = vrot.slane %v368_v46, 2 }
 0x1a6   : > { %v370_v52 = vmax.f32 %v368_v46, %v369_v48 }
 0x1a8   : > { %v371_v57 = vrot.slane %v370_v52, 1 }
 0x1aa   : > { %v372_v62 = vmax.f32 %v370_v52, %v371_v57 }
 0x1ae   : > { %v897_v30 = vpop.eup %705 }
 0x1af   : > { %v345_v31 = vsel %vm337_vm3, %v897_v30, 0.0 }
 0x1b0   : > { %346 = vadd.xlane.f32.xlu0 %v345_v31 }
 0x23d   : > { %v347_v32 = vpop.xlane.xlu0 %346 }
 0x23e   : > { %707 = vlog2.f32 %v347_v32 }
 0x248   : > { %v708_v38 = vpop.eup %707 }
 0x249   : > { %v349_v39 = vmul.f32 0.6931472, %v708_v38 }
 0x24b   : > { %v350_v40 = vadd.f32 %v349_v39, %v894_v27 }
 0x24d   : > { %v352_v41 = vsel %vm351_vm5, %v350_v40, 0.0 }
 0x24e   : > { %353 = vadd.xlane.f32.xlu1 %v352_v41  ;;  %v807_v41 = vmov (!%p606_p6), 0.0  }
 0x24f   : > { %v492_v42 = vsel (!%p606_p6), %vm491_vm8, 1.0, %v807_v41  ;;  %v479_v46 = vsel (!%p606_p6), %vm478_vm9, 1.0, %v807_v41 }
 0x252   : > { %438 = vadd.xlane.f32.xlu1 %v437_v43 }
 0x2db   : > { %v354_v47 = vpop.xlane.xlu1 %353 }
 0x2dc   : > { %v355_v49 = vrot.slane %v354_v47, 4 }
 0x2de   : > { %v356_v50 = vadd.f32 %v355_v49, %v354_v47 }
 0x2df   : > { %v439_v51 = vpop.xlane.xlu1 %438 }
 0x2e0   : > { %v357_v53 = vrot.slane %v356_v50, 2  ;;  %v440_v54 = vrot.slane %v439_v51, 4 }
 0x2e2   : > { %v441_v55 = vadd.f32 %v440_v54, %v439_v51  ;;  %v358_v56 = vadd.f32 %v357_v53, %v356_v50 }
 0x2e4   : > { %v442_v58 = vrot.slane %v441_v55, 2  ;;  %v359_v59 = vrot.slane %v358_v56, 1 }
 0x2e6   : > { %v360_v60 = vadd.f32 %v359_v59, %v358_v56  ;;  %v443_v61 = vadd.f32 %v442_v58, %v441_v55 }
 0x2e8   : > { %644 = vpush %v360_v60  ;;  %v444_v63 = vrot.slane %v443_v61, 1 }
 0x2e9   : > { %646 = vpush %v372_v62 }
 0x2ea   : > { %v445_v0 = vadd.f32 %v444_v63, %v443_v61 }
 0x2ec   : > { %648 = vpush %v445_v0 }
 0x319   : > { %s645_s22 = spop %644 }
 0x31a   : > { %v362_v3 = vstv %s645_s22  ;;  %s647_s23 = spop %646 }
 0x31b   : > { %v363_v5 = vadd.f32 %v362_v3, %v344_v1  ;;  %v374_v6 = vstv %s647_s23 }
 0x31c   : > { %v375_v7 = vmax.f32 %v366_v2, %v374_v6 }
 0x31d   : > { %365 = vst.msk [vmem:[#allocation5] sm:$0x1] %vm364_vm7, %v363_v5  ;;  %s649_s24 = spop %648 }
 0x31e   : > { %v377_v9 = vsub.f32 %v366_v2, %v375_v7  ;;  %v394_v10 = vrot.slane %v375_v7, %v909_v4  ;;  %415 = vst.msk [vmem:[#allocation4] sm:$0x1] %vm364_vm7, %v375_v7  ;;  %v447_v11 = vstv %s649_s24 }
 0x31f   : > { %v448_v12 = vadd.f32 %v447_v11, %v432_v8 }
 0x320   : > { %v378_v13 = vmul.f32 1.442695, %v377_v9  ;;  %v396_v14 = vsub.f32 %v894_v27, %v394_v10  ;;  %v376_v27 = vld [vmem:[#allocation3] sm:$0x1] }
 0x321   : > { %449 = vst.msk [vmem:[#allocation6] sm:$0x1] %vm364_vm7, %v448_v12 }
 0x322   : > { %709 = vpow2.f32 %v378_v13  ;;  %v397_v15 = vmul.f32 1.442695, %v396_v14 }
 0x324   : > { %711 = vpow2.f32 %v397_v15  ;;  %v607_v35 = vld [vmem:[#allocation5] ss:$0 sm:$0xff] (!%p606_p6) }
 0x328   : > { %v608_v33 = vld [vmem:[#allocation6] ss:$0 sm:$0xff] (!%p606_p6) }
 0x32c   : > { %v710_v16 = vpop.eup %709 }
 0x32d   : > { %382 = vperm.xlu1 %696, %v710_v16  }
 0x32e   : > { %v712_v17 = vpop.eup %711 }
 0x32f   : > { %401 = vperm.xlu0 %695, %v712_v17  }
 0x331   : > { %714 = vset.pattern.permute.xlu1 (!%p606_p6), %v806_v34 }
 0x332   : > { %500 = vperm.xlu1 (!%p606_p6), %714, %v608_v33  }
 0x333   : > { %713 = vset.pattern.permute.xlu0 (!%p606_p6), %v806_v34 }
 0x3ac   : > { %v383_v23 = vpop.permute.xlu1 %382 }
 0x3ad   : > { %v388_v25 = vrot.slane %v383_v23, %v909_v4 }
 0x3ae   : > { %v402_v18 = vpop.permute.xlu0 %401 }
 0x3af   : > { %v404_v19 = vmul.f32 %v897_v30, %v402_v18  ;;  %v389_v29 = vmul.f32 %v388_v25, %v376_v27  ;;  %v458_v30 = vld [vmem:[#allocation4] sm:$0x1] (!%p606_p6) }
 0x3b0   : > { %461 = vperm.xlu0 (!%p606_p6), %713, %v458_v30  }
 0x3b1   : > { %v405_v20 = vsel %vm337_vm3, %v404_v19, 0.0  ;;  %v501_v43 = vpop.permute.xlu1 (!%p606_p6), %500 }
 0x3b2   : > { %v406_v21 = vrot.slane %v405_v20, 4  ;;  %v503_v48 = vmul.f32 (!%p606_p6), %v501_v43, %v492_v42 }
 0x3b4   : > { %v407_v22 = vadd.f32 %v406_v21, %v405_v20  ;;  %487 = vperm.xlu0 (!%p606_p6), %713, %v607_v35  }
 0x3b6   : > { %v408_v24 = vrot.slane %v407_v22, 2 }
 0x3b8   : > { %v409_v26 = vadd.f32 %v408_v24, %v407_v22 }
 0x3ba   : > { %v410_v28 = vrot.slane %v409_v26, 1  ;;  %453 = sbr.rel (%p606_p6) target bundleno = 1081 (0x439), region = 40 }
 0x3bc   : > { %v411_v31 = vadd.f32 %v410_v28, %v409_v26 }
 0x3be   : > { %v412_v32 = vadd.f32 %v411_v31, %v389_v29 }
 0x3c0   : > { %414 = vst.msk [vmem:[#allocation3] sm:$0x1] %vm413_vm4, %v412_v32 }
 0x3c7   : > { %v454_v37 = vld [vmem:[#allocation3] sm:$0x1] }
 0x3c8   : > { %715 = vlog2.f32 %v454_v37  ;;  %vm455_vm10 = vcmp.gt.f32.partialorder %v454_v37, 0.0 }
 0x3d2   : > { %v716_v38 = vpop.eup %715 }
 0x3d3   : > { %v457_v39 = vmul.f32 0.6931472, %v716_v38 }
 0x42f   : > { %v462_v40 = vpop.permute.xlu0 %461 }
 0x430   : > { %v467_v44 = vrot.slane %v462_v40, %v909_v4 }
 0x432   : > { %v468_v47 = vadd.f32 %v467_v44, %v457_v39 }
 0x433   : > { %v488_v49 = vpop.permute.xlu0 %487 }
 0x434   : > { %v470_v50 = vsel %vm455_vm10, %v468_v47, %v469_v45  ;;  %v490_v51 = vmul.f32 %v488_v49, %v479_v46 }
 0x435   : > { %v475_v52 = vrot.slane %v470_v50, %v909_v4 }
 0x436   : > { %v504_v53 = vadd.f32 %v503_v48, %v490_v51 }
 0x437   : > { %477 = vst.msk [vmem:[#allocation8] sm:$0xff] %vm337_vm3, %v475_v52 }
 0x438   : > { %505 = vst [vmem:[#allocation10] sm:$0xff] %v504_v53 }
 0x439 PF: > { %p928_p7 = scmp.eq.s32.totalorder %s591_s0, 3  ;;  %s808_s25 = smov [#allocation8]  }
 0x43a   : > { %s515_s26 = sshll.u32 %s808_s25, 4  ;;  %s809_s27 = smov [#allocation10]   ;;  %s516_s26 = int_to_ptr.vmem [resolvable:$true] %s515_s26 }
 0x43b   : > { %s528_s28 = sshll.u32 %s809_s27, 4  ;;  %s717_s29 = scalar_lea.vmem %s516_s26, 128  ;;  %s932_s28 = int_to_ptr.vmem [resolvable:$true] %s528_s28 }
 0x43c   : > { %p718_p8 = scmp.ne.s32.totalorder %s516_s26, %s717_s29  ;;  %p724_p11 = scmp.lt.s32.totalorder %s516_s26, %s516_s26 }
 0x43d   : > { %p725_p12 = scmp.lt.s32.totalorder %s717_s29, %s717_s29 }
 0x43e   : > { %p719_p9 = pnand %p718_p8, %p928_p7 }
 0x43f   : > { %p726_p13 = por %p725_p12, %p724_p11 }
 0x440   : > { %p720_p10 = pneg %p719_p9 }
 0x442   : > { %p727_p0 = pnand %p726_p13, %p720_p10 }
 0x444   : > { %730 = shalt.err (!%p727_p0)
}
 0x445   : > { %s731_s5 = scalar_lea.hbm %s995_s3, 128 }
 0x446   : > { %p732_p1 = scmp.ne.s32.totalorder %s995_s3, %s731_s5  ;;  %p737_p4 = scmp.lt.u32.totalorder %s731_s5, %s995_s3 }
 0x448   : > { %p733_p2 = pnand %p732_p1, %p928_p7 }
 0x44a   : > { %p734_p3 = pneg %p733_p2 }
 0x44c   : > { %p739_p5 = pnand %p737_p4, %p734_p3 }
 0x44e   : > { %742 = shalt.err (!%p739_p5)
}
 0x44f   : > { %651 = dma.vmem_to_hbm [thread:$0]  (%p928_p7), %s516_s26, 128, %s995_s3, [#allocation9]  }
 0x450   : > { %s743_s12 = scalar_lea.vmem %s932_s28, 128  ;;  %p750_p10 = scmp.lt.s32.totalorder %s932_s28, %s932_s28 }
 0x451   : > { %p744_p6 = scmp.ne.s32.totalorder %s932_s28, %s743_s12  ;;  %p751_p11 = scmp.lt.s32.totalorder %s743_s12, %s743_s12 }
 0x453   : > { %p745_p8 = pnand %p744_p6, %p928_p7  ;;  %p752_p12 = por %p751_p11, %p750_p10 }
 0x455   : > { %p746_p9 = pneg %p745_p8 }
 0x457   : > { %p753_p13 = pnand %p752_p12, %p746_p9 }
 0x459   : > { %756 = shalt.err (!%p753_p13)
}
 0x45a   : > { %s757_s15 = scalar_lea.hbm %s996_s4, 128 }
 0x45b   : > { %p758_p0 = scmp.ne.s32.totalorder %s996_s4, %s757_s15  ;;  %p763_p3 = scmp.lt.u32.totalorder %s757_s15, %s996_s4 }
 0x45d   : > { %p759_p1 = pnand %p758_p0, %p928_p7 }
 0x45f   : > { %p760_p2 = pneg %p759_p1 }
 0x461   : > { %p765_p4 = pnand %p763_p3, %p760_p2 }
 0x463   : > { %768 = shalt.err (!%p765_p4)
}
 0x464   : > { %653 = dma.vmem_to_hbm [thread:$0]  (%p928_p7), %s932_s28, 128, %s996_s4, [#allocation11]  }
 0x465   : > { %782 = dma.done.wait (%p928_p7), [#allocation9], 128  }
 0x466   : > { %784 = vsyncadd (%p928_p7), [#allocation9], 4294967168 }
 0x467   : > { %786 = dma.done.wait (%p928_p7), [#allocation11], 128  }
 0x468   : > { %788 = vsyncadd (%p928_p7), [#allocation11], 4294967168 }
 0x469 PF: > { %s18_s19 = sadd.s32 1, %s799_s19   ;;  %s998_s17 = smov %s795_s18 }
 0x46a   : > { %p15_p5 = scmp.ge.s32.totalorder %s18_s19, 6   ;;  %s999_s18 = smov %s1001_s20 }
 0x46c   :  { %17 = sbr.rel (!%p15_p5) target bundleno = 5 (0x5), region = 77 }
 0x473   :  { %545 = vsyncpa [#allocation9], 1 }
 0x474   :  { %547 = vsyncpa [#allocation9 + $0x1], 1 }
 0x475   :  { %548 = vsyncpa [#allocation11], 1 }

</bundles_post_ra>
